<compile_context>
chip_gen: v5e
topology: v5e:2x2
jax: 0.10.0
libtpu: 0.0.40
codegen_flags: <defaults>
</compile_context>

<pallas_src>
import jax
import jax.numpy as jnp
from jax.experimental import pallas as pl
from jax.experimental.pallas import tpu as pltpu

# Logical (PyTorch) dims.
INPUT_DIM = 64
H1 = 200
H2 = 100
TARGET_DIM = 1          # nn.Linear(100, target_dim=1) default of the module
LN_EPS = 1e-5           # PyTorch nn.LayerNorm default

# Lane-aligned (padded) dims used inside the kernel.
H1_PAD = 256
H2_PAD = 128
OUT_LANES = 128         # packed-output lane width (128 batch rows per output row)
SUB = 128               # batch rows per inner sub-tile (must equal OUT_LANES)


def _round_up(x, m):
    return ((x + m - 1) // m) * m


def discriminator_kernel(x_ref,
                         w1_ref, b1_ref, g1_ref, be1_ref,
                         w2_ref, b2_ref, g2_ref, be2_ref,
                         w3_ref, b3_ref,
                         o_ref):
    # Small per-feature row vectors: read once per grid step.
    b1 = b1_ref[...]; g1 = g1_ref[...]; be1 = be1_ref[...]    # (1, 256) f32
    b2 = b2_ref[...]; g2 = g2_ref[...]; be2 = be2_ref[...]    # (1, 128) f32
    w3r = w3_ref[...]                                          # (1, 128) bf16 (= w3^T, padded)
    b3 = b3_ref[...]                                           # (1, 128) f32 (scalar bcast)

    def layernorm(h, inv_n, g, b):
        # Padded lanes of h are exactly zero (zero-padded weights/biases), so
        # plain sums divided by the true feature count are exact.
        mu = jnp.sum(h, axis=-1, keepdims=True) * inv_n
        ex2 = jnp.sum(h * h, axis=-1, keepdims=True) * inv_n
        var = jnp.maximum(ex2 - mu * mu, 0.0)
        return (h - mu) * jax.lax.rsqrt(var + LN_EPS) * g + b

    num_sub = o_ref.shape[0]          # = batch_tile // SUB (static Python int)

    def body(j, carry):
        r = pl.multiple_of(j * SUB, SUB)
        xs = x_ref[pl.ds(r, SUB), :].astype(jnp.bfloat16)             # (SUB, 64)

        # Linear(64 -> 200[pad 256]) + LayerNorm + ReLU
        h = jnp.dot(xs, w1_ref[...], preferred_element_type=jnp.float32) + b1
        h = jnp.maximum(layernorm(h, 1.0 / H1, g1, be1), 0.0)         # (SUB, 256) f32

        # Linear(200 -> 100[pad 128]) + LayerNorm + ReLU
        h = jnp.dot(h.astype(jnp.bfloat16), w2_ref[...],
                    preferred_element_type=jnp.float32) + b2
        h = jnp.maximum(layernorm(h, 1.0 / H2, g2, be2), 0.0)         # (SUB, 128) f32

        # Linear(100 -> 1), computed transposed (w3_row . h^T) so the SUB logits
        # land lane-dense as a single (1, SUB) row.
        row = jax.lax.dot_general(
            w3r, h.astype(jnp.bfloat16),
            dimension_numbers=(((1,), (1,)), ((), ())),
            preferred_element_type=jnp.float32) + b3                  # (1, SUB)
        o_ref[pl.ds(j, 1), :] = row
        return carry

    jax.lax.fori_loop(0, num_sub, body, 0)


def discriminator_forward(x, padded_params, *, batch_tile=1024):
    """x: [B, 64] float32; padded_params from prepare_params(). Returns [B, 1] f32."""
    B = x.shape[0]
    if B <= batch_tile:
        # Single grid step: the output block equals the full array, so any
        # multiple of 128 rows is a legal tile.
        bt = _round_up(max(B, SUB), SUB)
    else:
        # Multi-step grid: output block (bt//128, 128) needs bt % 1024 == 0.
        # Keeping bt <= B/2 here also leaves >=2 grid steps for v7x's 2 TCs.
        bt = _round_up(batch_tile, 8 * SUB)
    B_pad = _round_up(B, bt)

    x_p = x.astype(jnp.float32)
    if B_pad != B:
        x_p = jnp.pad(x_p, ((0, B_pad - B), (0, 0)))
    num_blocks = B_pad // bt

    in_specs = [pl.BlockSpec((bt, INPUT_DIM), lambda i: (i, 0))]
    # All params are small 2-D blocks with constant index maps (fetched once).
    in_specs += [pl.BlockSpec(p.shape, lambda i: (0, 0)) for p in padded_params]

    out = pl.pallas_call(
        discriminator_kernel,
        out_shape=jax.ShapeDtypeStruct((B_pad // OUT_LANES, OUT_LANES), jnp.float32),
        grid=(num_blocks,),
        in_specs=in_specs,
        out_specs=pl.BlockSpec((bt // OUT_LANES, OUT_LANES), lambda i: (i, 0)),
        compiler_params=pltpu.CompilerParams(
            dimension_semantics=("parallel",)),
    )(x_p, *padded_params)

    # packed[s, c] is the logit of batch row s*128 + c -> just reshape + trim.
    return out.reshape(B_pad, TARGET_DIM)[:B]


def init_params(key):
    """Deterministic synthetic params at logical sizes (PyTorch-Linear-like init),
    stored as [in_features, out_features] so the model computes x @ W + b."""
    def linear(key, fan_in, fan_out):
        k1, k2 = jax.random.split(key)
        bound = 1.0 / (fan_in ** 0.5)
        w = jax.random.uniform(k1, (fan_in, fan_out), jnp.float32, -bound, bound)
        b = jax.random.uniform(k2, (1, fan_out), jnp.float32, -bound, bound)
        return w, b

    k1, k2, k3 = jax.random.split(key, 3)
    w1, b1 = linear(k1, INPUT_DIM, H1)
    g1, be1 = jnp.ones((1, H1), jnp.float32), jnp.zeros((1, H1), jnp.float32)
    w2, b2 = linear(k2, H1, H2)
    g2, be2 = jnp.ones((1, H2), jnp.float32), jnp.zeros((1, H2), jnp.float32)
    w3, b3 = linear(k3, H2, TARGET_DIM)
    return (w1, b1, g1, be1, w2, b2, g2, be2, w3, b3)


def prepare_params(logical_params):
    """Zero-pad feature widths to lane multiples; weights -> bf16, rest -> f32.
    The final layer's weights are stored transposed as a (1, 128) row and its
    bias as a (1, 128) lane-broadcast scalar (matches the lane-packed output)."""
    (w1, b1, g1, be1, w2, b2, g2, be2, w3, b3) = logical_params
    assert w3.shape[1] == 1, "packed-output kernel is specialized to target_dim == 1"

    def pad2(a, rows, cols):
        out = jnp.zeros((rows, cols), jnp.float32)
        return out.at[: a.shape[0], : a.shape[1]].set(a.astype(jnp.float32))

    w1p = pad2(w1, INPUT_DIM, H1_PAD).astype(jnp.bfloat16)
    w2p = pad2(w2, H1_PAD, H2_PAD).astype(jnp.bfloat16)
    w3r = pad2(w3.T, 1, H2_PAD).astype(jnp.bfloat16)                   # (1, 128)
    b1p, g1p, be1p = (pad2(a, 1, H1_PAD) for a in (b1, g1, be1))
    b2p, g2p, be2p = (pad2(a, 1, H2_PAD) for a in (b2, g2, be2))
    b3p = jnp.full((1, OUT_LANES), b3[0, 0], jnp.float32)              # scalar bcast
    return (w1p, b1p, g1p, be1p, w2p, b2p, g2p, be2p, w3r, b3p)


def reference_forward(x, logical_params):
    """Pure-JAX reference with the same bf16-matmul / f32-LayerNorm numerics."""
    (w1, b1, g1, be1, w2, b2, g2, be2, w3, b3) = logical_params

    def ln(h, g, b):
        mu = jnp.mean(h, axis=-1, keepdims=True)
        var = jnp.mean((h - mu) ** 2, axis=-1, keepdims=True)  # biased, PyTorch-style
        return (h - mu) * jax.lax.rsqrt(var + LN_EPS) * g + b

    h = jnp.dot(x.astype(jnp.bfloat16), w1.astype(jnp.bfloat16),
                preferred_element_type=jnp.float32) + b1
    h = jnp.maximum(ln(h, g1, be1), 0.0)
    h = jnp.dot(h.astype(jnp.bfloat16), w2.astype(jnp.bfloat16),
                preferred_element_type=jnp.float32) + b2
    h = jnp.maximum(ln(h, g2, be2), 0.0)
    return jnp.dot(h.astype(jnp.bfloat16), w3.astype(jnp.bfloat16),
                   preferred_element_type=jnp.float32) + b3


if __name__ == "__main__":
    key = jax.random.PRNGKey(0)
    k_x, k_p = jax.random.split(key)

    logical_params = init_params(k_p)
    padded_params = prepare_params(logical_params)

    # B=2048: multi-step grid (2 x 1024-row tiles); B=500: padded single-block case.
    for B in (2048, 500):
        x = jax.random.normal(jax.random.fold_in(k_x, B), (B, INPUT_DIM), jnp.float32)
        out = jax.block_until_ready(discriminator_forward(x, padded_params))
        assert out.shape == (B, TARGET_DIM)
        ref = reference_forward(x, logical_params)
        max_err = float(jnp.max(jnp.abs(out - ref)))
        assert jnp.allclose(out, ref, atol=2e-3, rtol=2e-3), (
            f"B={B}: mismatch vs reference (max abs err {max_err})")

    print("KERNEL_OK")
</pallas_src>

<mosaic_0001>
module attributes {stable_mosaic.version = 11 : i64} {
  func.func @discriminator_kernel(%arg0: i32, %arg1: memref<1024x64xf32, #tpu.memory_space<vmem>>, %arg2: memref<64x256xbf16, #tpu.memory_space<vmem>>, %arg3: memref<1x256xf32, #tpu.memory_space<vmem>>, %arg4: memref<1x256xf32, #tpu.memory_space<vmem>>, %arg5: memref<1x256xf32, #tpu.memory_space<vmem>>, %arg6: memref<256x128xbf16, #tpu.memory_space<vmem>>, %arg7: memref<1x128xf32, #tpu.memory_space<vmem>>, %arg8: memref<1x128xf32, #tpu.memory_space<vmem>>, %arg9: memref<1x128xf32, #tpu.memory_space<vmem>>, %arg10: memref<1x128xbf16, #tpu.memory_space<vmem>>, %arg11: memref<1x128xf32, #tpu.memory_space<vmem>>, %arg12: memref<8x128xf32, #tpu.memory_space<vmem>>) attributes {dimension_semantics = [#tpu.dimension_semantics<parallel>], iteration_bounds = array<i64: 2>, scalar_prefetch = 0 : i64, scratch_operands = 0 : i64, tpu.core_type = #tpu.core_type<tc>, window_params = [{transform_indices = @transform_0, window_bounds = array<i64: 1024, 64>}, {pipeline_mode = #tpu.pipeline_mode<synchronous>, transform_indices = @transform_1, window_bounds = array<i64: 64, 256>}, {pipeline_mode = #tpu.pipeline_mode<synchronous>, transform_indices = @transform_2, window_bounds = array<i64: 1, 256>}, {pipeline_mode = #tpu.pipeline_mode<synchronous>, transform_indices = @transform_3, window_bounds = array<i64: 1, 256>}, {pipeline_mode = #tpu.pipeline_mode<synchronous>, transform_indices = @transform_4, window_bounds = array<i64: 1, 256>}, {pipeline_mode = #tpu.pipeline_mode<synchronous>, transform_indices = @transform_5, window_bounds = array<i64: 256, 128>}, {pipeline_mode = #tpu.pipeline_mode<synchronous>, transform_indices = @transform_6, window_bounds = array<i64: 1, 128>}, {pipeline_mode = #tpu.pipeline_mode<synchronous>, transform_indices = @transform_7, window_bounds = array<i64: 1, 128>}, {pipeline_mode = #tpu.pipeline_mode<synchronous>, transform_indices = @transform_8, window_bounds = array<i64: 1, 128>}, {pipeline_mode = #tpu.pipeline_mode<synchronous>, transform_indices = @transform_9, window_bounds = array<i64: 1, 128>}, {pipeline_mode = #tpu.pipeline_mode<synchronous>, transform_indices = @transform_10, window_bounds = array<i64: 1, 128>}, {transform_indices = @transform_11, window_bounds = array<i64: 8, 128>}]} {
    %c0 = arith.constant 0 : index
    %c0_0 = arith.constant 0 : index
    %0 = vector.load %arg3[%c0, %c0_0] : memref<1x256xf32, #tpu.memory_space<vmem>>, vector<1x256xf32>
    %c0_1 = arith.constant 0 : index
    %c0_2 = arith.constant 0 : index
    %1 = vector.load %arg4[%c0_1, %c0_2] : memref<1x256xf32, #tpu.memory_space<vmem>>, vector<1x256xf32>
    %c0_3 = arith.constant 0 : index
    %c0_4 = arith.constant 0 : index
    %2 = vector.load %arg5[%c0_3, %c0_4] : memref<1x256xf32, #tpu.memory_space<vmem>>, vector<1x256xf32>
    %c0_5 = arith.constant 0 : index
    %c0_6 = arith.constant 0 : index
    %3 = vector.load %arg7[%c0_5, %c0_6] : memref<1x128xf32, #tpu.memory_space<vmem>>, vector<1x128xf32>
    %c0_7 = arith.constant 0 : index
    %c0_8 = arith.constant 0 : index
    %4 = vector.load %arg8[%c0_7, %c0_8] : memref<1x128xf32, #tpu.memory_space<vmem>>, vector<1x128xf32>
    %c0_9 = arith.constant 0 : index
    %c0_10 = arith.constant 0 : index
    %5 = vector.load %arg9[%c0_9, %c0_10] : memref<1x128xf32, #tpu.memory_space<vmem>>, vector<1x128xf32>
    %c0_11 = arith.constant 0 : index
    %c0_12 = arith.constant 0 : index
    %6 = vector.load %arg10[%c0_11, %c0_12] : memref<1x128xbf16, #tpu.memory_space<vmem>>, vector<1x128xbf16>
    %c0_13 = arith.constant 0 : index
    %c0_14 = arith.constant 0 : index
    %7 = vector.load %arg11[%c0_13, %c0_14] : memref<1x128xf32, #tpu.memory_space<vmem>>, vector<1x128xf32>
    %c0_i32 = arith.constant 0 : i32
    %c8_i32 = arith.constant 8 : i32
    %8 = arith.addi %c0_i32, %c8_i32 : i32
    %c1_i32 = arith.constant 1 : i32
    scf.for %arg13 = %c0_i32 to %8 step %c1_i32  : i32 {
      %c128_i32 = arith.constant 128 : i32
      %9 = arith.muli %arg13, %c128_i32 : i32
      %10 = tpu.assume_multiple %9, 128 : i32
      %11 = arith.index_cast %10 : i32 to index
      %c0_16 = arith.constant 0 : index
      %12 = vector.load %arg1[%11, %c0_16] : memref<1024x64xf32, #tpu.memory_space<vmem>>, vector<128x64xf32>
      %13 = arith.truncf %12 : vector<128x64xf32> to vector<128x64xbf16>
      %c0_17 = arith.constant 0 : index
      %c0_18 = arith.constant 0 : index
      %14 = vector.load %arg2[%c0_17, %c0_18] : memref<64x256xbf16, #tpu.memory_space<vmem>>, vector<64x256xbf16>
      %cst = arith.constant dense<0.000000e+00> : vector<128x256xf32>
      %15 = tpu.matmul %13, %14, %cst {dimension_numbers = #tpu.dot_dimension_numbers<[1], [0], [0], [1], [0, 0, 1, 1], [], []>} : vector<128x64xbf16>, vector<64x256xbf16>, vector<128x256xf32> -> vector<128x256xf32>
      %16 = vector.broadcast %0 : vector<1x256xf32> to vector<128x256xf32>
      %17 = arith.addf %15, %16 : vector<128x256xf32>
      %cst_19 = arith.constant dense<0.000000e+00> : vector<128xf32>
      %18 = vector.multi_reduction <add>, %17, %cst_19 [1] : vector<128x256xf32> to vector<128xf32>
      %19 = vector.shape_cast %18 : vector<128xf32> to vector<128x1xf32>
      %cst_20 = arith.constant 5.000000e-03 : f32
      %20 = vector.broadcast %cst_20 : f32 to vector<128x1xf32>
      %21 = arith.mulf %19, %20 : vector<128x1xf32>
      %22 = arith.mulf %17, %17 : vector<128x256xf32>
      %cst_21 = arith.constant dense<0.000000e+00> : vector<128xf32>
      %23 = vector.multi_reduction <add>, %22, %cst_21 [1] : vector<128x256xf32> to vector<128xf32>
      %24 = vector.shape_cast %23 : vector<128xf32> to vector<128x1xf32>
      %cst_22 = arith.constant 5.000000e-03 : f32
      %25 = vector.broadcast %cst_22 : f32 to vector<128x1xf32>
      %26 = arith.mulf %24, %25 : vector<128x1xf32>
      %27 = arith.mulf %21, %21 : vector<128x1xf32>
      %28 = arith.subf %26, %27 : vector<128x1xf32>
      %cst_23 = arith.constant 0.000000e+00 : f32
      %29 = vector.broadcast %cst_23 : f32 to vector<128x1xf32>
      %30 = arith.maximumf %28, %29 : vector<128x1xf32>
      %31 = vector.broadcast %21 : vector<128x1xf32> to vector<128x256xf32>
      %32 = arith.subf %17, %31 : vector<128x256xf32>
      %cst_24 = arith.constant 9.99999974E-6 : f32
      %33 = vector.broadcast %cst_24 : f32 to vector<128x1xf32>
      %34 = arith.addf %30, %33 : vector<128x1xf32>
      %35 = math.rsqrt %34 : vector<128x1xf32>
      %36 = vector.broadcast %35 : vector<128x1xf32> to vector<128x256xf32>
      %37 = arith.mulf %32, %36 : vector<128x256xf32>
      %38 = vector.broadcast %1 : vector<1x256xf32> to vector<128x256xf32>
      %39 = arith.mulf %37, %38 : vector<128x256xf32>
      %40 = vector.broadcast %2 : vector<1x256xf32> to vector<128x256xf32>
      %41 = arith.addf %39, %40 : vector<128x256xf32>
      %cst_25 = arith.constant 0.000000e+00 : f32
      %42 = vector.broadcast %cst_25 : f32 to vector<128x256xf32>
      %43 = arith.maximumf %41, %42 : vector<128x256xf32>
      %44 = arith.truncf %43 : vector<128x256xf32> to vector<128x256xbf16>
      %c0_26 = arith.constant 0 : index
      %c0_27 = arith.constant 0 : index
      %45 = vector.load %arg6[%c0_26, %c0_27] : memref<256x128xbf16, #tpu.memory_space<vmem>>, vector<256x128xbf16>
      %cst_28 = arith.constant dense<0.000000e+00> : vector<128x128xf32>
      %46 = tpu.matmul %44, %45, %cst_28 {dimension_numbers = #tpu.dot_dimension_numbers<[1], [0], [0], [1], [0, 0, 1, 1], [], []>} : vector<128x256xbf16>, vector<256x128xbf16>, vector<128x128xf32> -> vector<128x128xf32>
      %47 = vector.broadcast %3 : vector<1x128xf32> to vector<128x128xf32>
      %48 = arith.addf %46, %47 : vector<128x128xf32>
      %cst_29 = arith.constant dense<0.000000e+00> : vector<128xf32>
      %49 = vector.multi_reduction <add>, %48, %cst_29 [1] : vector<128x128xf32> to vector<128xf32>
      %50 = vector.shape_cast %49 : vector<128xf32> to vector<128x1xf32>
      %cst_30 = arith.constant 0.00999999977 : f32
      %51 = vector.broadcast %cst_30 : f32 to vector<128x1xf32>
      %52 = arith.mulf %50, %51 : vector<128x1xf32>
      %53 = arith.mulf %48, %48 : vector<128x128xf32>
      %cst_31 = arith.constant dense<0.000000e+00> : vector<128xf32>
      %54 = vector.multi_reduction <add>, %53, %cst_31 [1] : vector<128x128xf32> to vector<128xf32>
      %55 = vector.shape_cast %54 : vector<128xf32> to vector<128x1xf32>
      %cst_32 = arith.constant 0.00999999977 : f32
      %56 = vector.broadcast %cst_32 : f32 to vector<128x1xf32>
      %57 = arith.mulf %55, %56 : vector<128x1xf32>
      %58 = arith.mulf %52, %52 : vector<128x1xf32>
      %59 = arith.subf %57, %58 : vector<128x1xf32>
      %cst_33 = arith.constant 0.000000e+00 : f32
      %60 = vector.broadcast %cst_33 : f32 to vector<128x1xf32>
      %61 = arith.maximumf %59, %60 : vector<128x1xf32>
      %62 = vector.broadcast %52 : vector<128x1xf32> to vector<128x128xf32>
      %63 = arith.subf %48, %62 : vector<128x128xf32>
      %cst_34 = arith.constant 9.99999974E-6 : f32
      %64 = vector.broadcast %cst_34 : f32 to vector<128x1xf32>
      %65 = arith.addf %61, %64 : vector<128x1xf32>
      %66 = math.rsqrt %65 : vector<128x1xf32>
      %67 = vector.broadcast %66 : vector<128x1xf32> to vector<128x128xf32>
      %68 = arith.mulf %63, %67 : vector<128x128xf32>
      %69 = vector.broadcast %4 : vector<1x128xf32> to vector<128x128xf32>
      %70 = arith.mulf %68, %69 : vector<128x128xf32>
      %71 = vector.broadcast %5 : vector<1x128xf32> to vector<128x128xf32>
      %72 = arith.addf %70, %71 : vector<128x128xf32>
      %cst_35 = arith.constant 0.000000e+00 : f32
      %73 = vector.broadcast %cst_35 : f32 to vector<128x128xf32>
      %74 = arith.maximumf %72, %73 : vector<128x128xf32>
      %75 = arith.truncf %74 : vector<128x128xf32> to vector<128x128xbf16>
      %cst_36 = arith.constant dense<0.000000e+00> : vector<1x128xf32>
      %76 = tpu.matmul %6, %75, %cst_36 {dimension_numbers = #tpu.dot_dimension_numbers<[1], [1], [0], [0], [0, 0, 1, 0], [], []>} : vector<1x128xbf16>, vector<128x128xbf16>, vector<1x128xf32> -> vector<1x128xf32>
      %77 = arith.addf %76, %7 : vector<1x128xf32>
      %78 = arith.index_cast %arg13 : i32 to index
      %c0_37 = arith.constant 0 : index
      %79 = vector.load %arg12[%78, %c0_37] : memref<8x128xf32, #tpu.memory_space<vmem>>, vector<1x128xf32>
      tpu.vector_store %arg12[%78, %c0_37], %77 {strides = array<i32>} : memref<8x128xf32, #tpu.memory_space<vmem>>, vector<1x128xf32>,
    }
    %c8_i32_15 = arith.constant 8 : i32
    return
  }
  func.func @transform_0(%arg0: i32) -> (i32, i32) {
    %c0_i32 = arith.constant 0 : i32
    %c0_i32_0 = arith.constant 0 : i32
    return %arg0, %c0_i32 : i32, i32
  }
  func.func @transform_1(%arg0: i32) -> (i32, i32) {
    %c0_i32 = arith.constant 0 : i32
    %c0_i32_0 = arith.constant 0 : i32
    %c0_i32_1 = arith.constant 0 : i32
    return %c0_i32, %c0_i32_0 : i32, i32
  }
  func.func @transform_2(%arg0: i32) -> (i32, i32) {
    %c0_i32 = arith.constant 0 : i32
    %c0_i32_0 = arith.constant 0 : i32
    %c0_i32_1 = arith.constant 0 : i32
    return %c0_i32, %c0_i32_0 : i32, i32
  }
  func.func @transform_3(%arg0: i32) -> (i32, i32) {
    %c0_i32 = arith.constant 0 : i32
    %c0_i32_0 = arith.constant 0 : i32
    %c0_i32_1 = arith.constant 0 : i32
    return %c0_i32, %c0_i32_0 : i32, i32
  }
  func.func @transform_4(%arg0: i32) -> (i32, i32) {
    %c0_i32 = arith.constant 0 : i32
    %c0_i32_0 = arith.constant 0 : i32
    %c0_i32_1 = arith.constant 0 : i32
    return %c0_i32, %c0_i32_0 : i32, i32
  }
  func.func @transform_5(%arg0: i32) -> (i32, i32) {
    %c0_i32 = arith.constant 0 : i32
    %c0_i32_0 = arith.constant 0 : i32
    %c0_i32_1 = arith.constant 0 : i32
    return %c0_i32, %c0_i32_0 : i32, i32
  }
  func.func @transform_6(%arg0: i32) -> (i32, i32) {
    %c0_i32 = arith.constant 0 : i32
    %c0_i32_0 = arith.constant 0 : i32
    %c0_i32_1 = arith.constant 0 : i32
    return %c0_i32, %c0_i32_0 : i32, i32
  }
  func.func @transform_7(%arg0: i32) -> (i32, i32) {
    %c0_i32 = arith.constant 0 : i32
    %c0_i32_0 = arith.constant 0 : i32
    %c0_i32_1 = arith.constant 0 : i32
    return %c0_i32, %c0_i32_0 : i32, i32
  }
  func.func @transform_8(%arg0: i32) -> (i32, i32) {
    %c0_i32 = arith.constant 0 : i32
    %c0_i32_0 = arith.constant 0 : i32
    %c0_i32_1 = arith.constant 0 : i32
    return %c0_i32, %c0_i32_0 : i32, i32
  }
  func.func @transform_9(%arg0: i32) -> (i32, i32) {
    %c0_i32 = arith.constant 0 : i32
    %c0_i32_0 = arith.constant 0 : i32
    %c0_i32_1 = arith.constant 0 : i32
    return %c0_i32, %c0_i32_0 : i32, i32
  }
  func.func @transform_10(%arg0: i32) -> (i32, i32) {
    %c0_i32 = arith.constant 0 : i32
    %c0_i32_0 = arith.constant 0 : i32
    %c0_i32_1 = arith.constant 0 : i32
    return %c0_i32, %c0_i32_0 : i32, i32
  }
  func.func @transform_11(%arg0: i32) -> (i32, i32) {
    %c0_i32 = arith.constant 0 : i32
    %c0_i32_0 = arith.constant 0 : i32
    return %arg0, %c0_i32 : i32, i32
  }
}

</mosaic_0001>

<bundles_post_ra>
// kernel: tpu_custom_call.1
= control target key start
LH: loop header
LB: loop body
LE: loop exit
PB: predicated region body
PF: predicated region fallthrough
CT: control target
= control target key end

     0   :  { %s3575_s0 = inlined_call_operand.vmem [shape: f32[2048,64], index: 0, kind: input, shape index: {}]   ;;  %s3576_s1 = inlined_call_operand.vmem [shape: bf16[64,256], index: 1, kind: input, shape index: {}]   ;;  %s3577_s2 = inlined_call_operand.vmem [shape: f32[1,256], index: 2, kind: input, shape index: {}]   ;;  %s3578_s3 = inlined_call_operand.vmem [shape: f32[1,256], index: 3, kind: input, shape index: {}]   ;;  %s3579_s4 = inlined_call_operand.vmem [shape: f32[1,256], index: 4, kind: input, shape index: {}]   ;;  %s3580_s5 = inlined_call_operand.vmem [shape: bf16[256,128], index: 5, kind: input, shape index: {}]   ;;  %s3581_s6 = inlined_call_operand.vmem [shape: f32[1,128], index: 6, kind: input, shape index: {}]   ;;  %s3582_s7 = inlined_call_operand.vmem [shape: f32[1,128], index: 7, kind: input, shape index: {}]   ;;  %s3583_s8 = inlined_call_operand.vmem [shape: f32[1,128], index: 8, kind: input, shape index: {}]   ;;  %s3584_s9 = inlined_call_operand.vmem [shape: bf16[1,128], index: 9, kind: input, shape index: {}]   ;;  %s3585_s10 = inlined_call_operand.vmem [shape: f32[1,128], index: 10, kind: input, shape index: {}]   ;;  %s3586_s11 = inlined_call_operand.hbm [shape: f32[16,128], index: 11, kind: output, shape index: {}]  }
   0x1   :  { %3591 = sst [smem:[#allocation12_spill]] %s3575_s0 }
   0x2   :  { %3592 = sst [smem:[#allocation13_spill]] %s3576_s1 }
   0x3   :  { %3593 = sst [smem:[#allocation14_spill]] %s3577_s2 }
   0x4   :  { %16 = vsyncpa [#allocation3], 0 }
   0x5   :  { %18 = vsyncpa [#allocation3 + $0x1], 0  ;;  %s2322_s17 = smov 0   ;;  %s2324_s18 = smov 0  }
   0x6   :  { %s2326_s19 = smov 0   ;;  %s2328_s20 = smov 0  }
   0x7 LB: > { %s2343_s21 = sadd.s32 4294967295, %s2256_s20   ;;  %s1931_s22 = sadd.s32 4294967294, %s2256_s20   ;;  %s2256_s20 = sphi %s2328_s20, %s3641_s20   ;;  %s2252_s19 = sphi %s2326_s19, %s3640_s19   ;;  %s2248_s18 = sphi %s2324_s18, %s3639_s18   ;;  %s2244_s17 = sphi %s2322_s17, %s3638_s17  }
   0x8   : > { %s2347_s23 = sadd.s32 1, %s2256_s20   ;;  %s267_s24 = sadd.s32 1, %s2252_s19 }
   0x9   : > { %s264_s25 = ssub.s32 %s2256_s20, %s2347_s23  ;;  %p277_p0 = scmp.ne.s32.totalorder %s2252_s19, %s2248_s18 }
   0xa   : > { %p265_p1 = scmp.eq.s32.totalorder %s264_s25, 0  ;;  %p278_p2 = scmp.eq.s32.totalorder %s2343_s21, 1 }
   0xb   : > { %p283_p3 = scmp.ne.s32.totalorder %s2248_s18, %s2244_s17  ;;  %p284_p4 = scmp.eq.s32.totalorder %s1931_s22, 1 }
   0xc   : > { %s2358_s26 = scalar_select %p265_p1, %s2252_s19, %s267_s24  }
   0xd   : > { %p2360_p5 = por %p278_p2, %p277_p0  ;;  %p2364_p6 = por %p284_p4, %p283_p3 }
   0xe   : > { %3594 = sst [smem:[#allocation5_spill]] %s2358_s26  ;;  %p1934_p7 = scmp.ge.s32.totalorder %s2256_s20, 1 }
   0xf   : > { %p341_p8 = scmp.lt.s32.totalorder %s2256_s20, 3 }
  0x11   : > { %p342_p9 = pnand %p1934_p7, %p341_p8 }
  0x13   : > { %345 = sbr.rel (%p342_p9) target bundleno = 970 (0x3ca), region = 64 }
  0x18   : > { %s3587_s29 = sand.u32 1, %s2248_s18   ;;  %s1936_s30 = sshll.u32 %s2343_s21, 7  ;;  %v2380_v1 = vld [vmem:[%s3578_s3] sm:$0x3] }
  0x19   : > { %s3597_s2 = sld [smem:[#allocation14_spill]]  ;;  %3599 = vst [vmem:[#allocation7_spill] sm:$0xff] %v2380_v1  ;;  %s2384_s16 = sshll.u32 %s3587_s29, 3  ;;  %v2389_v2 = vld [vmem:[%s3579_s4] sm:$0x3] }
  0x1a   : > { %p382_p10 = scmp.lt.s32.totalorder %s1936_s30, 255  ;;  %3600 = vst [vmem:[#allocation8_spill] sm:$0xff] %v2389_v2  ;;  %v2394_v3 = vld [vmem:[%s3581_s6] sm:$0x1]  ;;  %s3604_s0 = sld [smem:[#allocation12_spill]] }
  0x1b   : > { %v2399_v4 = vld [vmem:[%s3582_s7] sm:$0x1]  ;;  %s2422_s15 = smov 0  }
  0x1c   : > { %v2404_v5 = vld [vmem:[%s3583_s8] sm:$0x1]  ;;  %s3643_s30 = smov (!%p382_p10, %s1936_s30), 255 }
  0x1d   : > { %3601 = vst [vmem:[#allocation9_spill] sm:$0xff] %v2404_v5  ;;  %v2409_v6 = vld [vmem:[%s3584_s9] sm:$0x1]  ;;  %s1937_s25 = sshll.u32 %s3643_s30, 3 }
  0x1e   : > { %3602 = vst [vmem:[#allocation10_spill] sm:$0xff] %v2409_v6  ;;  %v2414_v7 = vld [vmem:[%s3585_s10] sm:$0x1] }
  0x1f   : > { %v2375_v0 = vld [vmem:[%s3597_s2] sm:$0x3]  ;;  %3603 = vst [vmem:[#allocation11_spill] sm:$0xff] %v2414_v7 }
  0x20   : > { %3598 = vst [vmem:[#allocation6_spill] sm:$0xff] %v2375_v0  ;;  %s2419_s2 = scalar_lea.vmem %s3604_s0, %s1937_s25 }
  0x21 LB: >> { %v3605_v2 = vld [vmem:[#allocation8_spill] sm:$0xff]  ;;  %v3606_v1 = vld [vmem:[#allocation7_spill] sm:$0xff]  ;;  %s3608_s1 = sld [smem:[#allocation13_spill]]  ;;  %s1938_s30 = sshll.u32 %s2260_s15, 7  ;;  %vm481_vm0 = vcmask 523264   ;;  %s2260_s15 = sphi %s2422_s15, %s401_s15  }
  0x22   : >> { %s2471_s13 = scalar_lea.vmem %s2419_s2, %s1938_s30  ;;  %s3633_s0 = scalar_lea.vmem [#allocation2], %s2384_s16 }
  0x23   : >> { %v404_v31 = vld [vmem:[%s2471_s13] sm:$0xff]  ;;  %v405_v32 = vld [vmem:[%s2471_s13 + $0x8] sm:$0xff]  ;;  %v406_v35 = vld [vmem:[%s2471_s13 + $0x10] sm:$0xff]  ;;  %s1846_s14 = scalar_lea.vmem %s3633_s0, %s2260_s15 [#allocation2]  ;;  %s401_s15 = sadd.s32 1, %s2260_s15  }
  0x24   : >> { %v420_v34 = vpack.c.bf16 %v405_v32, %v404_v31  ;;  %v407_v36 = vld [vmem:[%s2471_s13 + $0x18] sm:$0xff]  ;;  %v408_v38 = vld [vmem:[%s2471_s13 + $0x20] sm:$0xff]  ;;  %v409_v39 = vld [vmem:[%s2471_s13 + $0x28] sm:$0xff]  ;;  %p398_p11 = scmp.ge.s32.totalorder %s401_s15, 8  }
  0x25   : >> { %v421_v37 = vpack.c.bf16 %v407_v36, %v406_v35  ;;  %v422_v40 = vpack.c.bf16 %v409_v39, %v408_v38  ;;  %v410_v41 = vld [vmem:[%s2471_s13 + $0x30] sm:$0xff]  ;;  %v411_v42 = vld [vmem:[%s2471_s13 + $0x38] sm:$0xff]  ;;  %v412_v44 = vld [vmem:[%s2471_s13 + $0x40] sm:$0xff]  ;;  %s2052_s25 = sshll.u32 (%p398_p11), %s2343_s21, 3  ;;  %s3635_s24 = scalar_lea.vmem (%p398_p11), [#allocation2], %s2384_s16 }
  0x26   : >> { %v423_v43 = vpack.c.bf16 %v411_v42, %v410_v41  ;;  %v413_v45 = vld [vmem:[%s2471_s13 + $0x48] sm:$0xff]  ;;  %v414_v47 = vld [vmem:[%s2471_s13 + $0x50] sm:$0xff]  ;;  %v415_v48 = vld [vmem:[%s2471_s13 + $0x58] sm:$0xff]  ;;  %s1859_s22 = scalar_lea.hbm (%p398_p11), %s3586_s11, %s2052_s25  ;;  %s1861_s26 = sshll.u32 (%p398_p11), %s3635_s24, 4  ;;  %s1862_s26 = int_to_ptr.vmem [resolvable:$true] %s1861_s26 }
  0x27   : >> { %v3607_v0 = vld [vmem:[#allocation6_spill] sm:$0xff]  ;;  %v2062_v9 = vld [vmem:[%s3608_s1 + $0x34] sm:$0xf0]  ;;  %v1967_v12 = vld [vmem:[%s3608_s1 + $0x38] sm:$0xf0]  ;;  %v424_v46 = vpack.c.bf16 %v413_v45, %v412_v44  ;;  %v425_v49 = vpack.c.bf16 %v415_v48, %v414_v47  ;;  %s1863_s30 = sshll.u32 (%p398_p11), %s1859_s22, 4  ;;  %s1864_s30 = int_to_ptr.hbm [resolvable:$true] %s1863_s30 }
  0x28   : >> { %v1965_v8 = vld [vmem:[%s3608_s1 + $0x30] sm:$0xf]  ;;  %v2061_v10 = vld [vmem:[%s3608_s1 + $0x34] sm:$0xf]  ;;  %v1957_v13 = vld [vmem:[%s3608_s1 + $0x20] sm:$0xf] }
  0x29   : >> { %v1966_v11 = vor.u32 %v2062_v9, %v1965_v8  ;;  %v2060_v14 = vld [vmem:[%s3608_s1 + $0x24] sm:$0xf0]  ;;  %v1970_v15 = vor.u32 %v2061_v10, %v1967_v12  ;;  %v2059_v16 = vld [vmem:[%s3608_s1 + $0x24] sm:$0xf]  ;;  %v1959_v17 = vld [vmem:[%s3608_s1 + $0x28] sm:$0xf0] }
  0x2a   : >> { %v1958_v18 = vor.u32 %v2060_v14, %v1957_v13  ;;  %v1962_v19 = vor.u32 %v2059_v16, %v1959_v17  ;;  %v1949_v20 = vld [vmem:[%s3608_s1 + $0x10] sm:$0xf]  ;;  %v2058_v21 = vld [vmem:[%s3608_s1 + $0x14] sm:$0xf0]  ;;  %v2057_v22 = vld [vmem:[%s3608_s1 + $0x14] sm:$0xf] }
  0x2b   : >> { %510 = vmatpush.bf16.msra.mxu0 %v1966_v11  ;;  %559 = vmatpush.bf16.msra.mxu1 %v1970_v15  ;;  %v1951_v23 = vld [vmem:[%s3608_s1 + $0x18] sm:$0xf0]  ;;  %v1950_v24 = vor.u32 %v2058_v21, %v1949_v20  ;;  %v1941_v26 = vld [vmem:[%s3608_s1] sm:$0xf]  ;;  %v2056_v27 = vld [vmem:[%s3608_s1 + $0x4] sm:$0xf0] }
  0x2c   : >> { %v1954_v25 = vor.u32 %v2057_v22, %v1951_v23  ;;  %v2055_v28 = vld [vmem:[%s3608_s1 + $0x4] sm:$0xf]  ;;  %v1943_v29 = vld [vmem:[%s3608_s1 + $0x8] sm:$0xf0]  ;;  %v1942_v30 = vor.u32 %v2056_v27, %v1941_v26  ;;  %v418_v53 = vld [vmem:[%s2471_s13 + $0x70] sm:$0xff]  ;;  %v2512_v56 = vperm.slane %v3607_v0, 0 }
  0x2d   : >> { %v1946_v33 = vor.u32 %v2055_v28, %v1943_v29  ;;  %v416_v50 = vld [vmem:[%s2471_s13 + $0x60] sm:$0xff]  ;;  %v417_v51 = vld [vmem:[%s2471_s13 + $0x68] sm:$0xff]  ;;  %v419_v54 = vld [vmem:[%s2471_s13 + $0x78] sm:$0xff]  ;;  %v2515_v57 = vperm.slane %v3607_v0, 1  ;;  %s3636_s12 = sand.u32 (%p398_p11), 1, %s2248_s18   ;;  %s2210_s1 = scalar_lea.hbm (%p398_p11), %s3586_s11, 16 }
  0x2e   : >> { %v426_v52 = vpack.c.bf16 %v417_v51, %v416_v50  ;;  %v427_v55 = vpack.c.bf16 %v419_v54, %v418_v53  ;;  %s1849_s0 = scalar_lea.sflag (%p398_p11), [#allocation3], %s3636_s12 }
  0x2f   : >> { %511 = vmatpush.bf16.msra.mxu0 %v1958_v18  ;;  %560 = vmatpush.bf16.msra.mxu1 %v1962_v19 }
  0x33   : >> { %512 = vmatpush.bf16.msra.mxu0 %v1950_v24  ;;  %561 = vmatpush.bf16.msra.mxu1 %v1954_v25 }
  0x37   : >> { %513 = vmatpush.bf16.msra.mxu0 %v1942_v30  ;;  %562 = vmatpush.bf16.msra.mxu1 %v1946_v33 }
  0x3a   : >> { %1971 = vmatmul.msk.bf16.vlgmr.msra.gmra.mxu0 %vm481_vm0, %v420_v34  ;;  %1979 = vmatmul.msk.bf16.vlgmr.msra.gmra.mxu1 %vm481_vm0, %v420_v34 }
  0x4a   : >> { %1972 = vmatmul.msk.bf16.gmra.mxu0 %vm481_vm0, %v421_v37  ;;  %1980 = vmatmul.msk.bf16.gmra.mxu1 %vm481_vm0, %v421_v37 }
  0x5a   : >> { %1973 = vmatmul.msk.bf16.gmra.mxu0 %vm481_vm0, %v422_v40  ;;  %1981 = vmatmul.msk.bf16.gmra.mxu1 %vm481_vm0, %v422_v40 }
  0x6a   : >> { %1974 = vmatmul.msk.bf16.gmra.mxu0 %vm481_vm0, %v423_v43  ;;  %1982 = vmatmul.msk.bf16.gmra.mxu1 %vm481_vm0, %v423_v43 }
  0x7a   : >> { %1975 = vmatmul.msk.bf16.gmra.mxu0 %vm481_vm0, %v424_v46  ;;  %1983 = vmatmul.msk.bf16.gmra.mxu1 %vm481_vm0, %v424_v46 }
  0x8a   : >> { %1976 = vmatmul.msk.bf16.gmra.mxu0 %vm481_vm0, %v425_v49  ;;  %1984 = vmatmul.msk.bf16.gmra.mxu1 %vm481_vm0, %v425_v49 }
  0x9a   : >> { %1977 = vmatmul.msk.bf16.gmra.mxu0 %vm481_vm0, %v426_v52  ;;  %1985 = vmatmul.msk.bf16.gmra.mxu1 %vm481_vm0, %v426_v52 }
  0xaa   : >> { %1978 = vmatmul.msk.bf16.gmra.mxu0 %vm481_vm0, %v427_v55  ;;  %1986 = vmatmul.msk.bf16.gmra.mxu1 %vm481_vm0, %v427_v55 }
  0xb7   : >> { %v515_v58 = vpop.f32.mrf.mxu0  ;;  %v564_v60 = vpop.f32.mrf.mxu1 }
  0xb8   : >> { %v2518_v59 = vadd.f32 %v515_v58, %v2512_v56  ;;  %v2521_v61 = vadd.f32 %v564_v60, %v2515_v57 }
  0xba   : >> { %v668_v62 = vmul.f32 %v2518_v59, %v2518_v59  ;;  %v604_v63 = vadd.f32 %v2521_v61, %v2518_v59  ;;  %v669_v8 = vmul.f32 %v2521_v61, %v2521_v61 }
  0xbc   : >> { %605 = vadd.xlane.f32.xlu0 %v604_v63  ;;  %v700_v9 = vadd.f32 %v669_v8, %v668_v62 }
  0xbe   : >> { %701 = vadd.xlane.f32.xlu1 %v700_v9 }
  0xbf   : >> { %v517_v10 = vpop.f32.mrf.mxu0  ;;  %v566_v12 = vpop.f32.mrf.mxu1 }
  0xc0   : >> { %v2530_v11 = vadd.f32 %v517_v10, %v2512_v56  ;;  %v2533_v13 = vadd.f32 %v566_v12, %v2515_v57 }
  0xc2   : >> { %v670_v14 = vmul.f32 %v2530_v11, %v2530_v11  ;;  %v607_v15 = vadd.f32 %v2533_v13, %v2530_v11  ;;  %v671_v16 = vmul.f32 %v2533_v13, %v2533_v13 }
  0xc4   : >> { %608 = vadd.xlane.f32.xlu0 %v607_v15  ;;  %v703_v17 = vadd.f32 %v671_v16, %v670_v14 }
  0xc6   : >> { %704 = vadd.xlane.f32.xlu1 %v703_v17 }
  0xc7   : >> { %v520_v18 = vpop.f32.mrf.mxu0  ;;  %v569_v20 = vpop.f32.mrf.mxu1 }
  0xc8   : >> { %v2542_v19 = vadd.f32 %v520_v18, %v2512_v56  ;;  %v2545_v21 = vadd.f32 %v569_v20, %v2515_v57 }
  0xca   : >> { %v672_v22 = vmul.f32 %v2542_v19, %v2542_v19  ;;  %v610_v23 = vadd.f32 %v2545_v21, %v2542_v19  ;;  %v673_v24 = vmul.f32 %v2545_v21, %v2545_v21 }
  0xcc   : >> { %611 = vadd.xlane.f32.xlu2 %v610_v23  ;;  %v706_v25 = vadd.f32 %v673_v24, %v672_v22 }
  0xce   : >> { %707 = vadd.xlane.f32.xlu0 %v706_v25 }
  0xcf   : >> { %v522_v26 = vpop.f32.mrf.mxu0  ;;  %v571_v28 = vpop.f32.mrf.mxu1 }
  0xd0   : >> { %v2554_v27 = vadd.f32 %v522_v26, %v2512_v56  ;;  %v2557_v29 = vadd.f32 %v571_v28, %v2515_v57 }
  0xd2   : >> { %v674_v30 = vmul.f32 %v2554_v27, %v2554_v27  ;;  %v613_v31 = vadd.f32 %v2557_v29, %v2554_v27  ;;  %v675_v32 = vmul.f32 %v2557_v29, %v2557_v29 }
  0xd4   : >> { %614 = vadd.xlane.f32.xlu2 %v613_v31  ;;  %v709_v33 = vadd.f32 %v675_v32, %v674_v30 }
  0xd6   : >> { %710 = vadd.xlane.f32.xlu1 %v709_v33 }
  0xd7   : >> { %v525_v34 = vpop.f32.mrf.mxu0  ;;  %v574_v36 = vpop.f32.mrf.mxu1 }
  0xd8   : >> { %v2566_v35 = vadd.f32 %v525_v34, %v2512_v56  ;;  %v2569_v37 = vadd.f32 %v574_v36, %v2515_v57 }
  0xda   : >> { %v676_v38 = vmul.f32 %v2566_v35, %v2566_v35  ;;  %v616_v39 = vadd.f32 %v2569_v37, %v2566_v35  ;;  %v677_v40 = vmul.f32 %v2569_v37, %v2569_v37 }
  0xdc   : >> { %617 = vadd.xlane.f32.xlu2 %v616_v39  ;;  %v712_v41 = vadd.f32 %v677_v40, %v676_v38 }
  0xde   : >> { %713 = vadd.xlane.f32.xlu1 %v712_v41 }
  0xdf   : >> { %v527_v42 = vpop.f32.mrf.mxu0  ;;  %v576_v44 = vpop.f32.mrf.mxu1 }
  0xe0   : >> { %v2578_v43 = vadd.f32 %v527_v42, %v2512_v56  ;;  %v2581_v45 = vadd.f32 %v576_v44, %v2515_v57 }
  0xe2   : >> { %v678_v46 = vmul.f32 %v2578_v43, %v2578_v43  ;;  %v619_v47 = vadd.f32 %v2581_v45, %v2578_v43  ;;  %v679_v48 = vmul.f32 %v2581_v45, %v2581_v45 }
  0xe4   : >> { %620 = vadd.xlane.f32.xlu0 %v619_v47  ;;  %v715_v49 = vadd.f32 %v679_v48, %v678_v46 }
  0xe6   : >> { %716 = vadd.xlane.f32.xlu2 %v715_v49 }
  0xe7   : >> { %v530_v50 = vpop.f32.mrf.mxu0  ;;  %v579_v52 = vpop.f32.mrf.mxu1 }
  0xe8   : >> { %v2590_v51 = vadd.f32 %v530_v50, %v2512_v56  ;;  %v2593_v53 = vadd.f32 %v579_v52, %v2515_v57 }
  0xea   : >> { %v680_v54 = vmul.f32 %v2590_v51, %v2590_v51  ;;  %v622_v55 = vadd.f32 %v2593_v53, %v2590_v51  ;;  %v681_v58 = vmul.f32 %v2593_v53, %v2593_v53 }
  0xec   : >> { %623 = vadd.xlane.f32.xlu0 %v622_v55  ;;  %v718_v60 = vadd.f32 %v681_v58, %v680_v54 }
  0xee   : >> { %719 = vadd.xlane.f32.xlu2 %v718_v60 }
  0xef   : >> { %v532_v62 = vpop.f32.mrf.mxu0  ;;  %v581_v8 = vpop.f32.mrf.mxu1 }
  0xf0   : >> { %v2602_v63 = vadd.f32 %v532_v62, %v2512_v56  ;;  %v2605_v9 = vadd.f32 %v581_v8, %v2515_v57 }
  0xf2   : >> { %v682_v10 = vmul.f32 %v2602_v63, %v2602_v63  ;;  %v625_v12 = vadd.f32 %v2605_v9, %v2602_v63  ;;  %v683_v14 = vmul.f32 %v2605_v9, %v2605_v9 }
  0xf4   : >> { %626 = vadd.xlane.f32.xlu1 %v625_v12  ;;  %v721_v15 = vadd.f32 %v683_v14, %v682_v10 }
  0xf6   : >> { %722 = vadd.xlane.f32.xlu0 %v721_v15 }
  0xf7   : >> { %v535_v16 = vpop.f32.mrf.mxu0  ;;  %v584_v18 = vpop.f32.mrf.mxu1 }
  0xf8   : >> { %v2614_v17 = vadd.f32 %v535_v16, %v2512_v56  ;;  %v2617_v20 = vadd.f32 %v584_v18, %v2515_v57 }
  0xfa   : >> { %v684_v22 = vmul.f32 %v2614_v17, %v2614_v17  ;;  %v628_v23 = vadd.f32 %v2617_v20, %v2614_v17  ;;  %v685_v24 = vmul.f32 %v2617_v20, %v2617_v20 }
  0xfc   : >> { %629 = vadd.xlane.f32.xlu1 %v628_v23  ;;  %v724_v25 = vadd.f32 %v685_v24, %v684_v22  ;;  %v2070_v23 = vld [vmem:[%s3580_s5 + $0x38] sm:$0xff] }
  0xfd   : >> { %v2078_v24 = vld [vmem:[%s3580_s5 + $0x78] sm:$0xff]  ;;  %1305 = vmatpush.bf16.msra.mxu2 %v2070_v23 }
  0xfe   : >> { %725 = vadd.xlane.f32.xlu0 %v724_v25  ;;  %1354 = vmatpush.bf16.msra.mxu3 %v2078_v24 }
  0xff   : >> { %v537_v26 = vpop.f32.mrf.mxu0  ;;  %v586_v30 = vpop.f32.mrf.mxu1 }
 0x100   : >> { %v2626_v28 = vadd.f32 %v537_v26, %v2512_v56  ;;  %v2629_v31 = vadd.f32 %v586_v30, %v2515_v57 }
 0x102   : >> { %v686_v32 = vmul.f32 %v2626_v28, %v2626_v28  ;;  %v631_v33 = vadd.f32 %v2629_v31, %v2626_v28  ;;  %v687_v34 = vmul.f32 %v2629_v31, %v2629_v31 }
 0x104   : >> { %632 = vadd.xlane.f32.xlu2 %v631_v33  ;;  %v727_v36 = vadd.f32 %v687_v34, %v686_v32 }
 0x106   : >> { %728 = vadd.xlane.f32.xlu1 %v727_v36  ;;  %v2069_v36 = vld [vmem:[%s3580_s5 + $0x30] sm:$0xff] }
 0x107   : >> { %v540_v38 = vpop.f32.mrf.mxu0  ;;  %v589_v40 = vpop.f32.mrf.mxu1  ;;  %1306 = vmatpush.bf16.msra.mxu2 %v2069_v36 }
 0x108   : >> { %v2638_v39 = vadd.f32 %v540_v38, %v2512_v56  ;;  %v2641_v41 = vadd.f32 %v589_v40, %v2515_v57  ;;  %v2077_v38 = vld [vmem:[%s3580_s5 + $0x70] sm:$0xff] }
 0x109   : >> { %1355 = vmatpush.bf16.msra.mxu3 %v2077_v38 }
 0x10a   : >> { %v688_v42 = vmul.f32 %v2638_v39, %v2638_v39  ;;  %v634_v44 = vadd.f32 %v2641_v41, %v2638_v39  ;;  %v689_v46 = vmul.f32 %v2641_v41, %v2641_v41 }
 0x10c   : >> { %635 = vadd.xlane.f32.xlu2 %v634_v44  ;;  %v730_v47 = vadd.f32 %v689_v46, %v688_v42  ;;  %v2068_v44 = vld [vmem:[%s3580_s5 + $0x28] sm:$0xff] }
 0x10d   : >> { %v2076_v46 = vld [vmem:[%s3580_s5 + $0x68] sm:$0xff]  ;;  %1307 = vmatpush.bf16.msra.mxu2 %v2068_v44 }
 0x10e   : >> { %731 = vadd.xlane.f32.xlu1 %v730_v47  ;;  %1356 = vmatpush.bf16.msra.mxu3 %v2076_v46 }
 0x10f   : >> { %v542_v48 = vpop.f32.mrf.mxu0  ;;  %v591_v50 = vpop.f32.mrf.mxu1 }
 0x110   : >> { %v2650_v49 = vadd.f32 %v542_v48, %v2512_v56  ;;  %v2653_v52 = vadd.f32 %v591_v50, %v2515_v57 }
 0x112   : >> { %v690_v54 = vmul.f32 %v2650_v49, %v2650_v49  ;;  %v637_v55 = vadd.f32 %v2653_v52, %v2650_v49  ;;  %v691_v58 = vmul.f32 %v2653_v52, %v2653_v52 }
 0x114   : >> { %638 = vadd.xlane.f32.xlu0 %v637_v55  ;;  %v733_v60 = vadd.f32 %v691_v58, %v690_v54 }
 0x116   : >> { %734 = vadd.xlane.f32.xlu2 %v733_v60  ;;  %v2067_v60 = vld [vmem:[%s3580_s5 + $0x20] sm:$0xff] }
 0x117   : >> { %v545_v62 = vpop.f32.mrf.mxu0  ;;  %v594_v10 = vpop.f32.mrf.mxu1  ;;  %1308 = vmatpush.bf16.msra.mxu2 %v2067_v60 }
 0x118   : >> { %v2662_v8 = vadd.f32 %v545_v62, %v2512_v56  ;;  %v2665_v12 = vadd.f32 %v594_v10, %v2515_v57  ;;  %v2075_v62 = vld [vmem:[%s3580_s5 + $0x60] sm:$0xff] }
 0x119   : >> { %1357 = vmatpush.bf16.msra.mxu3 %v2075_v62 }
 0x11a   : >> { %v692_v14 = vmul.f32 %v2662_v8, %v2662_v8  ;;  %v640_v15 = vadd.f32 %v2665_v12, %v2662_v8  ;;  %v693_v16 = vmul.f32 %v2665_v12, %v2665_v12 }
 0x11c   : >> { %641 = vadd.xlane.f32.xlu0 %v640_v15  ;;  %v736_v18 = vadd.f32 %v693_v16, %v692_v14  ;;  %v2066_v15 = vld [vmem:[%s3580_s5 + $0x18] sm:$0xff] }
 0x11d   : >> { %v2074_v16 = vld [vmem:[%s3580_s5 + $0x58] sm:$0xff]  ;;  %1309 = vmatpush.bf16.msra.mxu2 %v2066_v15 }
 0x11e   : >> { %737 = vadd.xlane.f32.xlu2 %v736_v18  ;;  %1358 = vmatpush.bf16.msra.mxu3 %v2074_v16 }
 0x11f   : >> { %v547_v22 = vpop.f32.mrf.mxu0  ;;  %v596_v26 = vpop.f32.mrf.mxu1 }
 0x120   : >> { %v2680_v25 = vadd.f32 %v547_v22, %v2512_v56  ;;  %v2683_v30 = vadd.f32 %v596_v26, %v2515_v57 }
 0x122   : >> { %v694_v32 = vmul.f32 %v2680_v25, %v2680_v25  ;;  %v643_v33 = vadd.f32 %v2683_v30, %v2680_v25  ;;  %v695_v34 = vmul.f32 %v2683_v30, %v2683_v30 }
 0x124   : >> { %644 = vadd.xlane.f32.xlu1 %v643_v33  ;;  %v739_v40 = vadd.f32 %v695_v34, %v694_v32 }
 0x126   : >> { %740 = vadd.xlane.f32.xlu0 %v739_v40 }
 0x127   : >> { %v550_v42 = vpop.f32.mrf.mxu0  ;;  %v599_v48 = vpop.f32.mrf.mxu1 }
 0x128   : >> { %v2704_v47 = vadd.f32 %v550_v42, %v2512_v56  ;;  %v2707_v50 = vadd.f32 %v599_v48, %v2515_v57  ;;  %v2064_v48 = vld [vmem:[%s3580_s5 + $0x8] sm:$0xff] }
 0x12a   : >> { %v696_v54 = vmul.f32 %v2704_v47, %v2704_v47  ;;  %v646_v55 = vadd.f32 %v2707_v50, %v2704_v47  ;;  %v697_v58 = vmul.f32 %v2707_v50, %v2707_v50 }
 0x12c   : >> { %647 = vadd.xlane.f32.xlu1 %v646_v55  ;;  %v742_v10 = vadd.f32 %v697_v58, %v696_v54  ;;  %v2072_v54 = vld [vmem:[%s3580_s5 + $0x48] sm:$0xff] }
 0x12e   : >> { %743 = vadd.xlane.f32.xlu0 %v742_v10  ;;  %v2063_v10 = vld [vmem:[%s3580_s5] sm:$0xff] }
 0x12f   : >> { %v552_v14 = vpop.f32.mrf.mxu0  ;;  %v601_v22 = vpop.f32.mrf.mxu1 }
 0x130   : >> { %v2728_v18 = vadd.f32 %v552_v14, %v2512_v56  ;;  %v606_v23 = vpop.xlane.xlu0 %605  ;;  %v2731_v24 = vadd.f32 %v601_v22, %v2515_v57  ;;  %v2065_v56 = vld [vmem:[%s3580_s5 + $0x10] sm:$0xff]  ;;  %v2071_v14 = vld [vmem:[%s3580_s5 + $0x40] sm:$0xff] }
 0x131   : >> { %v2733_v26 = vmul.f32 0.005, %v606_v23  ;;  %v702_v32 = vpop.xlane.xlu1 %701  ;;  %v2073_v57 = vld [vmem:[%s3580_s5 + $0x50] sm:$0xff]  ;;  %1310 = vmatpush.bf16.msra.mxu2 %v2065_v56 }
 0x132   : >> { %v698_v33 = vmul.f32 %v2728_v18, %v2728_v18  ;;  %v748_v34 = vmul.f32 0.005, %v702_v32  ;;  %v649_v38 = vadd.f32 %v2731_v24, %v2728_v18  ;;  %v699_v40 = vmul.f32 %v2731_v24, %v2731_v24  ;;  %1359 = vmatpush.bf16.msra.mxu3 %v2073_v57 }
 0x133   : >> { %v764_v36 = vmul.f32 %v2733_v26, %v2733_v26 }
 0x134   : >> { %650 = vadd.xlane.f32.xlu2 %v649_v38  ;;  %v745_v44 = vadd.f32 %v699_v40, %v698_v33 }
 0x135   : >> { %v780_v42 = vsub.f32 %v748_v34, %v764_v36  ;;  %1311 = vmatpush.bf16.msra.mxu2 %v2064_v48 }
 0x136   : >> { %746 = vadd.xlane.f32.xlu1 %v745_v44  ;;  %1360 = vmatpush.bf16.msra.mxu3 %v2072_v54 }
 0x137   : >> { %v796_v46 = vmax.f32 %v780_v42, 0.0 }
 0x138   : >> { %v609_v55 = vpop.xlane.xlu0 %608 }
 0x139   : >> { %v844_v58 = vadd.f32 1e-05, %v796_v46  ;;  %v2755_v60 = vmul.f32 0.005, %v609_v55  ;;  %v705_v62 = vpop.xlane.xlu1 %704  ;;  %1312 = vmatpush.bf16.msra.mxu2 %v2063_v10 }
 0x13a   : >> { %v749_v15 = vmul.f32 0.005, %v705_v62  ;;  %1361 = vmatpush.bf16.msra.mxu3 %v2071_v14 }
 0x13b   : >> { %2126 = vrsqrt.f32 %v844_v58  ;;  %v765_v16 = vmul.f32 %v2755_v60, %v2755_v60  ;;  %vm866_vm2 = vweird.f32 %v844_v58 }
 0x13d   : >> { %v781_v22 = vsub.f32 %v749_v15, %v765_v16 }
 0x13f   : >> { %v797_v23 = vmax.f32 %v781_v22, 0.0  ;;  %v612_v32 = vpop.xlane.xlu2 %611 }
 0x140   : >> { %v2765_v34 = vmul.f32 0.005, %v612_v32 }
 0x141   : >> { %v2127_v33 = vpop.eup %2126  ;;  %v845_v56 = vadd.f32 1e-05, %v797_v23  ;;  %v708_v57 = vpop.xlane.xlu0 %707 }
 0x142   : >> { %v861_v36 = vmul.f32 %v2127_v33, %v844_v58  ;;  %v766_v38 = vmul.f32 %v2765_v34, %v2765_v34  ;;  %v750_v40 = vmul.f32 0.005, %v708_v57  ;;  %vm867_vm1 = vweird.f32 %v2127_v33 }
 0x143   : >> { %2128 = vrsqrt.f32 %v845_v56  ;;  %vm868_vm3 = vmor %vm866_vm2, %vm867_vm1  ;;  %v2781_v58 = vperm.slane %v3606_v1, 0  ;;  %vm876_vm5 = vweird.f32 %v845_v56 }
 0x144   : >> { %v862_v42 = vmul.f32 %v2127_v33, %v861_v36  ;;  %v782_v44 = vsub.f32 %v750_v40, %v766_v38  ;;  %v812_v36 = vsub.f32 %v2518_v59, %v2733_v26 }
 0x146   : >> { %v863_v46 = vmul.f32 0.5, %v862_v42  ;;  %v798_v48 = vmax.f32 %v782_v44, 0.0  ;;  %v813_v42 = vsub.f32 %v2521_v61, %v2733_v26 }
 0x147   : >> { %v615_v55 = vpop.xlane.xlu2 %614 }
 0x148   : >> { %v864_v54 = vsub.f32 1.5, %v863_v46  ;;  %v2769_v62 = vadd.f32 1e-05, %v798_v48  ;;  %v2771_v10 = vmul.f32 0.005, %v615_v55  ;;  %v2784_v55 = vperm.slane %v3606_v1, 1 }
 0x149   : >> { %v2129_v14 = vpop.eup %2128  ;;  %v711_v16 = vpop.xlane.xlu1 %710 }
 0x14a   : >> { %v865_v15 = vmul.f32 %v2127_v33, %v864_v54  ;;  %v871_v22 = vmul.f32 %v2129_v14, %v845_v56  ;;  %2130 = vrsqrt.f32 %v2769_v62  ;;  %v767_v23 = vmul.f32 %v2771_v10, %v2771_v10 }
 0x14b   : >> { %v751_v32 = vmul.f32 0.005, %v711_v16  ;;  %vm877_vm4 = vweird.f32 %v2129_v14  ;;  %vm886_vm8 = vweird.f32 %v2769_v62 }
 0x14c   : >> { %v872_v57 = vmul.f32 %v2129_v14, %v871_v22  ;;  %v869_v38 = vsel %vm868_vm3, %v2127_v33, %v865_v15  ;;  %v814_v15 = vsub.f32 %v2530_v11, %v2755_v60  ;;  %vm878_vm6 = vmor %vm876_vm5, %vm877_vm4 }
 0x14d   : >> { %v783_v40 = vsub.f32 %v751_v32, %v767_v23  ;;  %v1020_v46 = vmul.f32 %v869_v38, %v812_v36  ;;  %v1021_v33 = vmul.f32 %v869_v38, %v813_v42  ;;  %v2794_v23 = vperm.slane %v3605_v2, 0 }
 0x14e   : >> { %v873_v44 = vmul.f32 0.5, %v872_v57  ;;  %v815_v38 = vsub.f32 %v2533_v13, %v2755_v60 }
 0x14f   : >> { %v799_v48 = vmax.f32 %v783_v40, 0.0  ;;  %v618_v54 = vpop.xlane.xlu2 %617  ;;  %v1057_v57 = vmul.f32 %v2781_v58, %v1020_v46 }
 0x150   : >> { %v2131_v16 = vpop.eup %2130  ;;  %v874_v0 = vsub.f32 1.5, %v873_v44  ;;  %v2786_v59 = vmul.f32 0.005, %v618_v54  ;;  %v1058_v44 = vmul.f32 %v2784_v55, %v1021_v33 }
 0x151   : >> { %v881_v61 = vmul.f32 %v2131_v16, %v2769_v62  ;;  %v2791_v26 = vadd.f32 1e-05, %v799_v48  ;;  %v714_v22 = vpop.xlane.xlu1 %713  ;;  %v2804_v48 = vperm.slane %v3605_v2, 1  ;;  %v1094_v46 = vadd.f32 %v2794_v23, %v1057_v57 }
 0x152   : >> { %v875_v32 = vmul.f32 %v2129_v14, %v874_v0  ;;  %v768_v36 = vmul.f32 %v2786_v59, %v2786_v59  ;;  %v752_v40 = vmul.f32 0.005, %v714_v22  ;;  %vm887_vm7 = vweird.f32 %v2131_v16 }
 0x153   : >> { %v882_v11 = vmul.f32 %v2131_v16, %v881_v61  ;;  %2132 = vrsqrt.f32 %v2791_v26  ;;  %v1095_v33 = vadd.f32 %v2804_v48, %v1058_v44  ;;  %vm888_vm9 = vmor %vm886_vm8, %vm887_vm7  ;;  %v816_v62 = vsub.f32 %v2542_v19, %v2765_v34 }
 0x154   : >> { %v879_v42 = vsel %vm878_vm6, %v2129_v14, %v875_v32  ;;  %v784_v56 = vsub.f32 %v752_v40, %v768_v36  ;;  %vm896_vm11 = vweird.f32 %v2791_v26 }
 0x155   : >> { %v883_v0 = vmul.f32 0.5, %v882_v11  ;;  %v1022_v54 = vmul.f32 %v879_v42, %v814_v15  ;;  %v1023_v1 = vmul.f32 %v879_v42, %v815_v38  ;;  %v1126_v42 = vmax.f32 %v1094_v46, 0.0 }
 0x156   : >> { %v800_v6 = vmax.f32 %v784_v56, 0.0  ;;  %v1127_v44 = vmax.f32 %v1095_v33, 0.0 }
 0x157   : >> { %v884_v7 = vsub.f32 1.5, %v883_v0  ;;  %v621_v13 = vpop.xlane.xlu0 %620  ;;  %v1059_v60 = vmul.f32 %v2781_v58, %v1022_v54  ;;  %v1060_v61 = vmul.f32 %v2784_v55, %v1023_v1 }
 0x158   : >> { %v2809_v14 = vmul.f32 0.005, %v621_v13  ;;  %v2812_v11 = vadd.f32 1e-05, %v800_v6 }
 0x159   : >> { %v2133_v22 = vpop.eup %2132  ;;  %v885_v32 = vmul.f32 %v2131_v16, %v884_v7  ;;  %v717_v15 = vpop.xlane.xlu2 %716  ;;  %v1096_v36 = vadd.f32 %v2794_v23, %v1059_v60  ;;  %v1097_v57 = vadd.f32 %v2804_v48, %v1060_v61 }
 0x15a   : >> { %v891_v38 = vmul.f32 %v2133_v22, %v2791_v26  ;;  %2134 = vrsqrt.f32 %v2812_v11  ;;  %v753_v1 = vmul.f32 0.005, %v717_v15  ;;  %v769_v40 = vmul.f32 %v2809_v14, %v2809_v14 }
 0x15b   : >> { %v1128_v7 = vmax.f32 %v1096_v36, 0.0  ;;  %v1129_v0 = vmax.f32 %v1097_v57, 0.0  ;;  %v889_v54 = vsel %vm888_vm9, %v2131_v16, %v885_v32  ;;  %v817_v15 = vsub.f32 %v2545_v21, %v2765_v34 }
 0x15c   : >> { %v892_v6 = vmul.f32 %v2133_v22, %v891_v38  ;;  %v785_v56 = vsub.f32 %v753_v1, %v769_v40  ;;  %vm897_vm10 = vweird.f32 %v2133_v22  ;;  %v1024_v33 = vmul.f32 %v889_v54, %v816_v62 }
 0x15d   : >> { %v1158_v60 = vpack.c.bf16 %v1128_v7, %v1126_v42  ;;  %v1159_v61 = vpack.c.bf16 %v1129_v0, %v1127_v44  ;;  %v1025_v19 = vmul.f32 %v889_v54, %v817_v15  ;;  %v818_v21 = vsub.f32 %v2554_v27, %v2771_v10  ;;  %vm898_vm12 = vmor %vm896_vm11, %vm897_vm10 }
 0x15e   : >> { %v893_v13 = vmul.f32 0.5, %v892_v6  ;;  %v801_v2 = vmax.f32 %v785_v56, 0.0  ;;  %v819_v34 = vsub.f32 %v2557_v29, %v2771_v10  ;;  %v1061_v6 = vmul.f32 %v2781_v58, %v1024_v33 }
 0x15f   : >> { %v624_v5 = vpop.xlane.xlu0 %623  ;;  %1313 = vmatmul.bf16.vlgmr.msra.gmra.mxu2 %v1158_v60  ;;  %1362 = vmatmul.bf16.vlgmr.msra.gmra.mxu3 %v1159_v61  ;;  %v1062_v44 = vmul.f32 %v2784_v55, %v1025_v19  ;;  %vm906_vm14 = vweird.f32 %v2812_v11 }
 0x160   : >> { %v894_v46 = vsub.f32 1.5, %v893_v13  ;;  %v2826_v36 = vmul.f32 0.005, %v624_v5  ;;  %v2135_v57 = vpop.eup %2134  ;;  %v2828_v16 = vadd.f32 1e-05, %v801_v2  ;;  %v1098_v60 = vadd.f32 %v2794_v23, %v1061_v6 }
 0x161   : >> { %v720_v32 = vpop.xlane.xlu2 %719  ;;  %v901_v1 = vmul.f32 %v2135_v57, %v2812_v11  ;;  %vm907_vm13 = vweird.f32 %v2135_v57  ;;  %v821_v11 = vsub.f32 %v2569_v37, %v2786_v59 }
 0x162   : >> { %v895_v38 = vmul.f32 %v2133_v22, %v894_v46  ;;  %2136 = vrsqrt.f32 %v2828_v16  ;;  %v754_v5 = vmul.f32 0.005, %v720_v32  ;;  %v770_v2 = vmul.f32 %v2826_v36, %v2826_v36  ;;  %vm908_vm15 = vmor %vm906_vm14, %vm907_vm13 }
 0x163   : >> { %v902_v40 = vmul.f32 %v2135_v57, %v901_v1  ;;  %v1099_v46 = vadd.f32 %v2804_v48, %v1062_v44  ;;  %vm916_vm1 = vweird.f32 %v2828_v16 }
 0x164   : >> { %v899_v42 = vsel %vm898_vm12, %v2133_v22, %v895_v38  ;;  %v786_v27 = vsub.f32 %v754_v5, %v770_v2  ;;  %v1130_v5 = vmax.f32 %v1098_v60, 0.0 }
 0x165   : >> { %v1026_v26 = vmul.f32 %v899_v42, %v818_v21  ;;  %v1027_v7 = vmul.f32 %v899_v42, %v819_v34  ;;  %v903_v0 = vmul.f32 0.5, %v902_v40  ;;  %v1131_v42 = vmax.f32 %v1099_v46, 0.0 }
 0x166   : >> { %v802_v62 = vmax.f32 %v786_v27, 0.0  ;;  %v823_v46 = vsub.f32 %v2581_v45, %v2809_v14 }
 0x167   : >> { %v627_v56 = vpop.xlane.xlu1 %626  ;;  %v1063_v29 = vmul.f32 %v2781_v58, %v1026_v26  ;;  %v1064_v10 = vmul.f32 %v2784_v55, %v1027_v7  ;;  %v904_v54 = vsub.f32 1.5, %v903_v0  ;;  %v820_v7 = vsub.f32 %v2566_v35, %v2786_v59 }
 0x168   : >> { %v2843_v13 = vmul.f32 0.005, %v627_v56  ;;  %v2137_v22 = vpop.eup %2136  ;;  %v2850_v38 = vadd.f32 1e-05, %v802_v62  ;;  %v822_v59 = vsub.f32 %v2578_v43, %v2809_v14 }
 0x169   : >> { %v723_v61 = vpop.xlane.xlu0 %722  ;;  %v1100_v15 = vadd.f32 %v2794_v23, %v1063_v29  ;;  %v1101_v33 = vadd.f32 %v2804_v48, %v1064_v10  ;;  %v905_v32 = vmul.f32 %v2135_v57, %v904_v54  ;;  %v911_v19 = vmul.f32 %v2137_v22, %v2828_v16 }
 0x16a   : >> { %v771_v1 = vmul.f32 %v2843_v13, %v2843_v13  ;;  %v755_v21 = vmul.f32 0.005, %v723_v61  ;;  %2138 = vrsqrt.f32 %v2850_v38  ;;  %vm917_vm0 = vweird.f32 %v2137_v22 }
 0x16b   : >> { %v912_v34 = vmul.f32 %v2137_v22, %v911_v19  ;;  %v1132_v40 = vmax.f32 %v1100_v15, 0.0  ;;  %v1133_v6 = vmax.f32 %v1101_v33, 0.0  ;;  %v909_v26 = vsel %vm908_vm15, %v2135_v57, %v905_v32  ;;  %vm918_vm2 = vmor %vm916_vm1, %vm917_vm0 }
 0x16c   : >> { %v787_v2 = vsub.f32 %v755_v21, %v771_v1  ;;  %v1028_v62 = vmul.f32 %v909_v26, %v820_v7  ;;  %v1029_v61 = vmul.f32 %v909_v26, %v821_v11  ;;  %vm926_vm4 = vweird.f32 %v2850_v38 }
 0x16d   : >> { %v913_v44 = vmul.f32 0.5, %v912_v34  ;;  %v1160_v0 = vpack.c.bf16 %v1132_v40, %v1130_v5  ;;  %v1161_v56 = vpack.c.bf16 %v1133_v6, %v1131_v42 }
 0x16e   : >> { %v803_v27 = vmax.f32 %v787_v2, 0.0  ;;  %v1065_v1 = vmul.f32 %v2781_v58, %v1028_v62  ;;  %v1066_v5 = vmul.f32 %v2784_v55, %v1029_v61 }
 0x16f   : >> { %v630_v29 = vpop.xlane.xlu1 %629  ;;  %v914_v10 = vsub.f32 1.5, %v913_v44  ;;  %1318 = vmatmul.bf16.gmra.mxu2 %v1160_v0  ;;  %1367 = vmatmul.bf16.gmra.mxu3 %v1161_v56 }
 0x170   : >> { %v2860_v54 = vmul.f32 0.005, %v630_v29  ;;  %v2862_v60 = vadd.f32 1e-05, %v803_v27  ;;  %v2139_v35 = vpop.eup %2138  ;;  %v1103_v11 = vadd.f32 %v2804_v48, %v1066_v5 }
 0x171   : >> { %v726_v57 = vpop.xlane.xlu0 %725  ;;  %v915_v15 = vmul.f32 %v2137_v22, %v914_v10  ;;  %v921_v33 = vmul.f32 %v2139_v35, %v2850_v38  ;;  %vm927_vm3 = vweird.f32 %v2139_v35 }
 0x172   : >> { %v772_v37 = vmul.f32 %v2860_v54, %v2860_v54  ;;  %2140 = vrsqrt.f32 %v2862_v60  ;;  %v756_v32 = vmul.f32 0.005, %v726_v57  ;;  %vm928_vm5 = vmor %vm926_vm4, %vm927_vm3  ;;  %vm936_vm7 = vweird.f32 %v2862_v60 }
 0x173   : >> { %v919_v19 = vsel %vm918_vm2, %v2137_v22, %v915_v15  ;;  %v922_v21 = vmul.f32 %v2139_v35, %v921_v33  ;;  %v1102_v22 = vadd.f32 %v2794_v23, %v1065_v1 }
 0x174   : >> { %v1030_v16 = vmul.f32 %v919_v19, %v822_v59  ;;  %v1031_v34 = vmul.f32 %v919_v19, %v823_v46  ;;  %v788_v40 = vsub.f32 %v756_v32, %v772_v37  ;;  %v1135_v46 = vmax.f32 %v1103_v11, 0.0 }
 0x175   : >> { %v923_v2 = vmul.f32 0.5, %v922_v21  ;;  %v1134_v15 = vmax.f32 %v1102_v22, 0.0  ;;  %v824_v19 = vsub.f32 %v2590_v51, %v2826_v36  ;;  %v825_v21 = vsub.f32 %v2593_v53, %v2826_v36 }
 0x176   : >> { %v1067_v42 = vmul.f32 %v2781_v58, %v1030_v16  ;;  %v1068_v45 = vmul.f32 %v2784_v55, %v1031_v34  ;;  %v804_v14 = vmax.f32 %v788_v40, 0.0  ;;  %v826_v36 = vsub.f32 %v2602_v63, %v2843_v13 }
 0x177   : >> { %v633_v43 = vpop.xlane.xlu2 %632  ;;  %v924_v7 = vsub.f32 1.5, %v923_v2  ;;  %v827_v22 = vsub.f32 %v2605_v9, %v2843_v13 }
 0x178   : >> { %v2877_v6 = vmul.f32 0.005, %v633_v43  ;;  %v2141_v26 = vpop.eup %2140  ;;  %v1104_v0 = vadd.f32 %v2794_v23, %v1067_v42  ;;  %v1105_v27 = vadd.f32 %v2804_v48, %v1068_v45  ;;  %v2884_v29 = vadd.f32 1e-05, %v804_v14 }
 0x179   : >> { %v729_v44 = vpop.xlane.xlu1 %728  ;;  %v931_v56 = vmul.f32 %v2141_v26, %v2862_v60  ;;  %v925_v10 = vmul.f32 %v2139_v35, %v924_v7  ;;  %vm937_vm6 = vweird.f32 %v2141_v26 }
 0x17a   : >> { %v773_v62 = vmul.f32 %v2877_v6, %v2877_v6  ;;  %v757_v57 = vmul.f32 0.005, %v729_v44  ;;  %2142 = vrsqrt.f32 %v2884_v29  ;;  %v1136_v37 = vmax.f32 %v1104_v0, 0.0  ;;  %vm938_vm8 = vmor %vm936_vm7, %vm937_vm6 }
 0x17b   : >> { %v932_v61 = vmul.f32 %v2141_v26, %v931_v56  ;;  %v1137_v33 = vmax.f32 %v1105_v27, 0.0  ;;  %v929_v32 = vsel %vm928_vm5, %v2139_v35, %v925_v10  ;;  %vm946_vm10 = vweird.f32 %v2884_v29 }
 0x17c   : >> { %v789_v59 = vsub.f32 %v757_v57, %v773_v62  ;;  %v1162_v38 = vpack.c.bf16 %v1136_v37, %v1134_v15  ;;  %v1032_v43 = vmul.f32 %v929_v32, %v824_v19  ;;  %v1033_v45 = vmul.f32 %v929_v32, %v825_v21 }
 0x17d   : >> { %v933_v1 = vmul.f32 0.5, %v932_v61  ;;  %v1163_v34 = vpack.c.bf16 %v1137_v33, %v1135_v46 }
 0x17e   : >> { %v805_v16 = vmax.f32 %v789_v59, 0.0  ;;  %v1069_v11 = vmul.f32 %v2781_v58, %v1032_v43  ;;  %v1070_v10 = vmul.f32 %v2784_v55, %v1033_v45 }
 0x17f   : >> { %v636_v5 = vpop.xlane.xlu2 %635  ;;  %v934_v40 = vsub.f32 1.5, %v933_v1  ;;  %1323 = vmatmul.bf16.gmra.mxu2 %v1162_v38  ;;  %1372 = vmatmul.bf16.gmra.mxu3 %v1163_v34 }
 0x180   : >> { %v2895_v2 = vmul.f32 0.005, %v636_v5  ;;  %v2897_v42 = vadd.f32 1e-05, %v805_v16  ;;  %v2143_v51 = vpop.eup %2142  ;;  %v1107_v32 = vadd.f32 %v2804_v48, %v1070_v10 }
 0x181   : >> { %v732_v35 = vpop.xlane.xlu1 %731  ;;  %v935_v14 = vmul.f32 %v2141_v26, %v934_v40  ;;  %v941_v7 = vmul.f32 %v2143_v51, %v2884_v29  ;;  %vm947_vm9 = vweird.f32 %v2143_v51 }
 0x182   : >> { %v774_v53 = vmul.f32 %v2895_v2, %v2895_v2  ;;  %2144 = vrsqrt.f32 %v2897_v42  ;;  %v758_v44 = vmul.f32 0.005, %v732_v35  ;;  %vm948_vm11 = vmor %vm946_vm10, %vm947_vm9  ;;  %v1139_v45 = vmax.f32 %v1107_v32, 0.0 }
 0x183   : >> { %v939_v0 = vsel %vm938_vm8, %v2141_v26, %v935_v14  ;;  %v942_v27 = vmul.f32 %v2143_v51, %v941_v7  ;;  %v1106_v26 = vadd.f32 %v2794_v23, %v1069_v11  ;;  %v829_v7 = vsub.f32 %v2617_v20, %v2860_v54 }
 0x184   : >> { %v1034_v60 = vmul.f32 %v939_v0, %v826_v36  ;;  %v1035_v56 = vmul.f32 %v939_v0, %v827_v22  ;;  %v790_v62 = vsub.f32 %v758_v44, %v774_v53  ;;  %v828_v36 = vsub.f32 %v2614_v17, %v2860_v54 }
 0x185   : >> { %v943_v57 = vmul.f32 0.5, %v942_v27  ;;  %v1138_v40 = vmax.f32 %v1106_v26, 0.0  ;;  %vm956_vm13 = vweird.f32 %v2897_v42  ;;  %v830_v20 = vsub.f32 %v2626_v28, %v2877_v6 }
 0x186   : >> { %v1071_v61 = vmul.f32 %v2781_v58, %v1034_v60  ;;  %v1072_v9 = vmul.f32 %v2784_v55, %v1035_v56  ;;  %v806_v13 = vmax.f32 %v790_v62, 0.0  ;;  %v831_v54 = vsub.f32 %v2629_v31, %v2877_v6 }
 0x187   : >> { %v639_v63 = vpop.xlane.xlu0 %638  ;;  %v944_v59 = vsub.f32 1.5, %v943_v57 }
 0x188   : >> { %v2912_v15 = vmul.f32 0.005, %v639_v63  ;;  %v2145_v37 = vpop.eup %2144  ;;  %v1108_v33 = vadd.f32 %v2794_v23, %v1071_v61  ;;  %v1109_v19 = vadd.f32 %v2804_v48, %v1072_v9  ;;  %v2919_v38 = vadd.f32 1e-05, %v806_v13 }
 0x189   : >> { %v735_v46 = vpop.xlane.xlu2 %734  ;;  %v951_v1 = vmul.f32 %v2145_v37, %v2897_v42  ;;  %v945_v21 = vmul.f32 %v2143_v51, %v944_v59  ;;  %vm957_vm12 = vweird.f32 %v2145_v37 }
 0x18a   : >> { %v759_v16 = vmul.f32 0.005, %v735_v46  ;;  %v775_v34 = vmul.f32 %v2912_v15, %v2912_v15  ;;  %2146 = vrsqrt.f32 %v2919_v38  ;;  %v1140_v43 = vmax.f32 %v1108_v33, 0.0  ;;  %vm958_vm14 = vmor %vm956_vm13, %vm957_vm12 }
 0x18b   : >> { %v952_v5 = vmul.f32 %v2145_v37, %v951_v1  ;;  %v1141_v14 = vmax.f32 %v1109_v19, 0.0  ;;  %v949_v53 = vsel %vm948_vm11, %v2143_v51, %v945_v21  ;;  %vm966_vm0 = vweird.f32 %v2919_v38 }
 0x18c   : >> { %v791_v35 = vsub.f32 %v759_v16, %v775_v34  ;;  %v1164_v29 = vpack.c.bf16 %v1140_v43, %v1138_v40  ;;  %v1036_v56 = vmul.f32 %v949_v53, %v828_v36  ;;  %v1037_v62 = vmul.f32 %v949_v53, %v829_v7 }
 0x18d   : >> { %v953_v22 = vmul.f32 0.5, %v952_v5  ;;  %v1165_v0 = vpack.c.bf16 %v1141_v14, %v1139_v45 }
 0x18e   : >> { %v807_v44 = vmax.f32 %v791_v35, 0.0  ;;  %v1073_v26 = vmul.f32 %v2781_v58, %v1036_v56  ;;  %v1074_v33 = vmul.f32 %v2784_v55, %v1037_v62 }
 0x18f   : >> { %v642_v11 = vpop.xlane.xlu0 %641  ;;  %v954_v27 = vsub.f32 1.5, %v953_v22  ;;  %1328 = vmatmul.bf16.gmra.mxu2 %v1164_v29  ;;  %1377 = vmatmul.bf16.gmra.mxu3 %v1165_v0 }
 0x190   : >> { %v2930_v60 = vmul.f32 0.005, %v642_v11  ;;  %v2932_v10 = vadd.f32 1e-05, %v807_v44  ;;  %v2147_v17 = vpop.eup %2146  ;;  %v1111_v43 = vadd.f32 %v2804_v48, %v1074_v33 }
 0x191   : >> { %v738_v51 = vpop.xlane.xlu2 %737  ;;  %v955_v57 = vmul.f32 %v2145_v37, %v954_v27  ;;  %v961_v61 = vmul.f32 %v2147_v17, %v2919_v38  ;;  %vm967_vm15 = vweird.f32 %v2147_v17  ;;  %v833_v38 = vsub.f32 %v2641_v41, %v2895_v2 }
 0x192   : >> { %v760_v63 = vmul.f32 0.005, %v738_v51  ;;  %2148 = vrsqrt.f32 %v2932_v10  ;;  %v776_v9 = vmul.f32 %v2930_v60, %v2930_v60  ;;  %vm968_vm1 = vmor %vm966_vm0, %vm967_vm15  ;;  %v1143_v11 = vmax.f32 %v1111_v43, 0.0 }
 0x193   : >> { %v959_v13 = vsel %vm958_vm14, %v2145_v37, %v955_v57  ;;  %v962_v59 = vmul.f32 %v2147_v17, %v961_v61  ;;  %v1110_v37 = vadd.f32 %v2794_v23, %v1073_v26  ;;  %v832_v51 = vsub.f32 %v2638_v39, %v2895_v2 }
 0x194   : >> { %v1038_v42 = vmul.f32 %v959_v13, %v830_v20  ;;  %v1039_v46 = vmul.f32 %v959_v13, %v831_v54  ;;  %v792_v28 = vsub.f32 %v760_v63, %v776_v9  ;;  %vm976_vm3 = vweird.f32 %v2932_v10 }
 0x195   : >> { %v963_v32 = vmul.f32 0.5, %v962_v59  ;;  %v1142_v7 = vmax.f32 %v1110_v37, 0.0  ;;  %v834_v2 = vsub.f32 %v2650_v49, %v2912_v15 }
 0x196   : >> { %v1075_v31 = vmul.f32 %v2781_v58, %v1038_v42  ;;  %v1076_v6 = vmul.f32 %v2784_v55, %v1039_v46  ;;  %v808_v1 = vmax.f32 %v792_v28, 0.0  ;;  %v835_v46 = vsub.f32 %v2653_v52, %v2912_v15 }
 0x197   : >> { %v645_v19 = vpop.xlane.xlu1 %644  ;;  %v964_v34 = vsub.f32 1.5, %v963_v32 }
 0x198   : >> { %v2947_v21 = vmul.f32 0.005, %v645_v19  ;;  %v2149_v16 = vpop.eup %2148  ;;  %v1112_v40 = vadd.f32 %v2794_v23, %v1075_v31  ;;  %v1113_v35 = vadd.f32 %v2804_v48, %v1076_v6  ;;  %v2954_v14 = vadd.f32 1e-05, %v808_v1 }
 0x199   : >> { %v741_v5 = vpop.xlane.xlu0 %740  ;;  %v971_v45 = vmul.f32 %v2149_v16, %v2932_v10  ;;  %v965_v53 = vmul.f32 %v2147_v17, %v964_v34  ;;  %vm977_vm2 = vweird.f32 %v2149_v16 }
 0x19a   : >> { %v777_v36 = vmul.f32 %v2947_v21, %v2947_v21  ;;  %v761_v22 = vmul.f32 0.005, %v741_v5  ;;  %2150 = vrsqrt.f32 %v2954_v14  ;;  %v1144_v44 = vmax.f32 %v1112_v40, 0.0  ;;  %vm978_vm4 = vmor %vm976_vm3, %vm977_vm2 }
 0x19b   : >> { %v972_v29 = vmul.f32 %v2149_v16, %v971_v45  ;;  %v1145_v27 = vmax.f32 %v1113_v35, 0.0  ;;  %v969_v56 = vsel %vm968_vm1, %v2147_v17, %v965_v53  ;;  %vm986_vm6 = vweird.f32 %v2954_v14 }
 0x19c   : >> { %v793_v0 = vsub.f32 %v761_v22, %v777_v36  ;;  %v1166_v57 = vpack.c.bf16 %v1144_v44, %v1142_v7  ;;  %v1040_v13 = vmul.f32 %v969_v56, %v832_v51  ;;  %v1041_v26 = vmul.f32 %v969_v56, %v833_v38 }
 0x19d   : >> { %v973_v62 = vmul.f32 0.5, %v972_v29  ;;  %v1167_v20 = vpack.c.bf16 %v1145_v27, %v1143_v11  ;;  %v836_v44 = vsub.f32 %v2662_v8, %v2930_v60 }
 0x19e   : >> { %v809_v63 = vmax.f32 %v793_v0, 0.0  ;;  %v1077_v19 = vmul.f32 %v2781_v58, %v1040_v13  ;;  %v1078_v10 = vmul.f32 %v2784_v55, %v1041_v26 }
 0x19f   : >> { %v648_v54 = vpop.xlane.xlu1 %647  ;;  %v974_v61 = vsub.f32 1.5, %v973_v62  ;;  %1333 = vmatmul.bf16.gmra.mxu2 %v1166_v57  ;;  %1382 = vmatmul.bf16.gmra.mxu3 %v1167_v20  ;;  %v837_v20 = vsub.f32 %v2665_v12, %v2930_v60  ;;  %v839_v12 = vsub.f32 %v2683_v30, %v2947_v21 }
 0x1a0   : >> { %v2965_v9 = vmul.f32 0.005, %v648_v54  ;;  %v2967_v59 = vadd.f32 1e-05, %v809_v63  ;;  %v2151_v39 = vpop.eup %2150  ;;  %v1114_v40 = vadd.f32 %v2794_v23, %v1077_v19 }
 0x1a1   : >> { %v744_v17 = vpop.xlane.xlu0 %743  ;;  %v975_v42 = vmul.f32 %v2149_v16, %v974_v61  ;;  %v981_v33 = vmul.f32 %v2151_v39, %v2954_v14  ;;  %vm987_vm5 = vweird.f32 %v2151_v39 }
 0x1a2   : >> { %v778_v41 = vmul.f32 %v2965_v9, %v2965_v9  ;;  %2152 = vrsqrt.f32 %v2967_v59  ;;  %v762_v28 = vmul.f32 0.005, %v744_v17  ;;  %vm988_vm7 = vmor %vm986_vm6, %vm987_vm5  ;;  %v1146_v51 = vmax.f32 %v1114_v40, 0.0 }
 0x1a3   : >> { %v979_v32 = vsel %vm978_vm4, %v2149_v16, %v975_v42  ;;  %v982_v31 = vmul.f32 %v2151_v39, %v981_v33  ;;  %v1115_v16 = vadd.f32 %v2804_v48, %v1078_v10  ;;  %vm996_vm9 = vweird.f32 %v2967_v59 }
 0x1a4   : >> { %v1042_v6 = vmul.f32 %v979_v32, %v834_v2  ;;  %v1043_v1 = vmul.f32 %v979_v32, %v835_v46  ;;  %v794_v37 = vsub.f32 %v762_v28, %v778_v41 }
 0x1a5   : >> { %v983_v49 = vmul.f32 0.5, %v982_v31  ;;  %v1147_v62 = vmax.f32 %v1115_v16, 0.0 }
 0x1a6   : >> { %v1079_v34 = vmul.f32 %v2781_v58, %v1042_v6  ;;  %v1080_v52 = vmul.f32 %v2784_v55, %v1043_v1  ;;  %v810_v15 = vmax.f32 %v794_v37, 0.0 }
 0x1a7   : >> { %v651_v5 = vpop.xlane.xlu2 %650  ;;  %v984_v35 = vsub.f32 1.5, %v983_v49 }
 0x1a8   : >> { %v2153_v43 = vpop.eup %2152  ;;  %v2985_v45 = vmul.f32 0.005, %v651_v5  ;;  %v1116_v53 = vadd.f32 %v2794_v23, %v1079_v34  ;;  %v1117_v36 = vadd.f32 %v2804_v48, %v1080_v52  ;;  %v858_v29 = vadd.f32 1e-05, %v810_v15 }
 0x1a9   : >> { %v991_v22 = vmul.f32 %v2153_v43, %v2967_v59  ;;  %v747_v7 = vpop.xlane.xlu1 %746  ;;  %v985_v0 = vmul.f32 %v2151_v39, %v984_v35  ;;  %vm997_vm8 = vweird.f32 %v2153_v43 }
 0x1aa   : >> { %v779_v11 = vmul.f32 %v2985_v45, %v2985_v45  ;;  %2154 = vrsqrt.f32 %v858_v29  ;;  %v763_v56 = vmul.f32 0.005, %v747_v7  ;;  %v1148_v38 = vmax.f32 %v1116_v53, 0.0  ;;  %vm998_vm10 = vmor %vm996_vm9, %vm997_vm8 }
 0x1ab   : >> { %v992_v27 = vmul.f32 %v2153_v43, %v991_v22  ;;  %v1149_v57 = vmax.f32 %v1117_v36, 0.0  ;;  %v989_v63 = vsel %vm988_vm7, %v2151_v39, %v985_v0  ;;  %v838_v39 = vsub.f32 %v2680_v25, %v2947_v21 }
 0x1ac   : >> { %v795_v54 = vsub.f32 %v763_v56, %v779_v11  ;;  %v1168_v61 = vpack.c.bf16 %v1148_v38, %v1146_v51  ;;  %v1044_v13 = vmul.f32 %v989_v63, %v836_v44  ;;  %v1045_v42 = vmul.f32 %v989_v63, %v837_v20 }
 0x1ad   : >> { %v993_v8 = vmul.f32 0.5, %v992_v27  ;;  %v1169_v14 = vpack.c.bf16 %v1149_v57, %v1147_v62  ;;  %vm1006_vm12 = vweird.f32 %v858_v29  ;;  %v840_v22 = vsub.f32 %v2704_v47, %v2965_v9 }
 0x1ae   : >> { %v811_v17 = vmax.f32 %v795_v54, 0.0  ;;  %v1081_v33 = vmul.f32 %v2781_v58, %v1044_v13  ;;  %v1082_v32 = vmul.f32 %v2784_v55, %v1045_v42  ;;  %v841_v7 = vsub.f32 %v2707_v50, %v2965_v9 }
 0x1af   : >> { %v994_v26 = vsub.f32 1.5, %v993_v8  ;;  %1338 = vmatmul.bf16.gmra.mxu2 %v1168_v61  ;;  %1387 = vmatmul.bf16.gmra.mxu3 %v1169_v14  ;;  %v842_v51 = vsub.f32 %v2728_v18, %v2985_v45  ;;  %v843_v38 = vsub.f32 %v2731_v24, %v2985_v45 }
 0x1b0   : >> { %v2155_v41 = vpop.eup %2154  ;;  %v859_v46 = vadd.f32 1e-05, %v811_v17  ;;  %v1118_v1 = vadd.f32 %v2794_v23, %v1081_v33  ;;  %v1119_v30 = vadd.f32 %v2804_v48, %v1082_v32 }
 0x1b1   : >> { %v995_v2 = vmul.f32 %v2153_v43, %v994_v26  ;;  %v1001_v60 = vmul.f32 %v2155_v41, %v858_v29  ;;  %vm1007_vm11 = vweird.f32 %v2155_v41 }
 0x1b2   : >> { %2156 = vrsqrt.f32 %v859_v46  ;;  %v1150_v5 = vmax.f32 %v1118_v1, 0.0  ;;  %vm1008_vm13 = vmor %vm1006_vm12, %vm1007_vm11  ;;  %v1151_v16 = vmax.f32 %v1119_v30, 0.0  ;;  %vm1016_vm15 = vweird.f32 %v859_v46 }
 0x1b3   : >> { %v999_v28 = vsel %vm998_vm10, %v2153_v43, %v995_v2  ;;  %v1002_v19 = vmul.f32 %v2155_v41, %v1001_v60 }
 0x1b4   : >> { %v1046_v10 = vmul.f32 %v999_v28, %v838_v39  ;;  %v1047_v31 = vmul.f32 %v999_v28, %v839_v12 }
 0x1b5   : >> { %v1003_v6 = vmul.f32 0.5, %v1002_v19 }
 0x1b6   : >> { %v1083_v59 = vmul.f32 %v2781_v58, %v1046_v10  ;;  %v1084_v25 = vmul.f32 %v2784_v55, %v1047_v31 }
 0x1b7   : >> { %v1004_v21 = vsub.f32 1.5, %v1003_v6 }
 0x1b8   : >> { %v1120_v37 = vadd.f32 %v2794_v23, %v1083_v59  ;;  %v1121_v49 = vadd.f32 %v2804_v48, %v1084_v25  ;;  %v2157_v34 = vpop.eup %2156 }
 0x1b9   : >> { %v1005_v52 = vmul.f32 %v2155_v41, %v1004_v21  ;;  %v1011_v15 = vmul.f32 %v2157_v34, %v859_v46  ;;  %vm1017_vm14 = vweird.f32 %v2157_v34 }
 0x1ba   : >> { %v1152_v40 = vmax.f32 %v1120_v37, 0.0  ;;  %v1153_v43 = vmax.f32 %v1121_v49, 0.0  ;;  %vm1018_vm0 = vmor %vm1016_vm15, %vm1017_vm14 }
 0x1bb   : >> { %v1012_v35 = vmul.f32 %v2157_v34, %v1011_v15  ;;  %v1009_v36 = vsel %vm1008_vm13, %v2155_v41, %v1005_v52 }
 0x1bc   : >> { %v1170_v53 = vpack.c.bf16 %v1152_v40, %v1150_v5  ;;  %v1171_v44 = vpack.c.bf16 %v1153_v43, %v1151_v16  ;;  %v1048_v11 = vmul.f32 %v1009_v36, %v840_v22  ;;  %v1049_v29 = vmul.f32 %v1009_v36, %v841_v7 }
 0x1bd   : >> { %v1013_v0 = vmul.f32 0.5, %v1012_v35 }
 0x1be   : >> { %v1085_v47 = vmul.f32 %v2781_v58, %v1048_v11  ;;  %v1086_v50 = vmul.f32 %v2784_v55, %v1049_v29 }
 0x1bf   : >> { %v1014_v27 = vsub.f32 1.5, %v1013_v0  ;;  %1343 = vmatmul.bf16.gmra.mxu2 %v1170_v53  ;;  %1392 = vmatmul.bf16.gmra.mxu3 %v1171_v44 }
 0x1c0   : >> { %v1122_v20 = vadd.f32 %v2794_v23, %v1085_v47  ;;  %v1123_v54 = vadd.f32 %v2804_v48, %v1086_v50 }
 0x1c1   : >> { %v1015_v56 = vmul.f32 %v2157_v34, %v1014_v27 }
 0x1c2   : >> { %v1154_v45 = vmax.f32 %v1122_v20, 0.0  ;;  %v1155_v14 = vmax.f32 %v1123_v54, 0.0 }
 0x1c3   : >> { %v1019_v9 = vsel %vm1018_vm0, %v2157_v34, %v1015_v56 }
 0x1c4   : >> { %v1050_v62 = vmul.f32 %v1019_v9, %v842_v51  ;;  %v1051_v57 = vmul.f32 %v1019_v9, %v843_v38 }
 0x1c6   : >> { %v1087_v63 = vmul.f32 %v2781_v58, %v1050_v62  ;;  %v1088_v8 = vmul.f32 %v2784_v55, %v1051_v57  ;;  %v3028_v58 = vperm.slane %v2394_v3, 0 }
 0x1c8   : >> { %v1124_v18 = vadd.f32 %v2794_v23, %v1087_v63  ;;  %v1125_v24 = vadd.f32 %v2804_v48, %v1088_v8 }
 0x1ca   : >> { %v1156_v61 = vmax.f32 %v1124_v18, 0.0  ;;  %v1157_v13 = vmax.f32 %v1125_v24, 0.0 }
 0x1cc   : >> { %v1172_v26 = vpack.c.bf16 %v1156_v61, %v1154_v45  ;;  %v1173_v17 = vpack.c.bf16 %v1157_v13, %v1155_v14 }
 0x1cf   : >> { %1348 = vmatmul.bf16.gmra.mxu2 %v1172_v26  ;;  %1397 = vmatmul.bf16.gmra.mxu3 %v1173_v17 }
 0x1e2   : >> { %v1314_v42 = vpop.f32.mrf.mxu2  ;;  %v1363_v41 = vpop.f32.mrf.mxu3 }
 0x1e3   : >> { %v1315_v55 = vadd.f32 %v1314_v42, %v3028_v58 }
 0x1e5   : >> { %v3031_v2 = vadd.f32 %v1363_v41, %v1315_v55 }
 0x1ea   : >> { %v1316_v23 = vpop.f32.mrf.mxu2  ;;  %v1365_v46 = vpop.f32.mrf.mxu3 }
 0x1eb   : >> { %v1317_v48 = vadd.f32 %v1316_v23, %v3028_v58 }
 0x1ed   : >> { %v3034_v39 = vadd.f32 %v1365_v46, %v1317_v48 }
 0x1f2   : >> { %v1319_v12 = vpop.f32.mrf.mxu2  ;;  %v1368_v33 = vpop.f32.mrf.mxu3 }
 0x1f3   : >> { %v1320_v60 = vadd.f32 %v1319_v12, %v3028_v58 }
 0x1f5   : >> { %v3037_v28 = vadd.f32 %v1368_v33, %v1320_v60 }
 0x1fa   : >> { %v1321_v32 = vpop.f32.mrf.mxu2  ;;  %v1370_v10 = vpop.f32.mrf.mxu3 }
 0x1fb   : >> { %v1322_v19 = vadd.f32 %v1321_v32, %v3028_v58 }
 0x1fd   : >> { %v3040_v31 = vadd.f32 %v1370_v10, %v1322_v19 }
 0x202   : >> { %v1324_v6 = vpop.f32.mrf.mxu2  ;;  %v1373_v1 = vpop.f32.mrf.mxu3 }
 0x203   : >> { %v1325_v59 = vadd.f32 %v1324_v6, %v3028_v58 }
 0x205   : >> { %v3043_v25 = vadd.f32 %v1373_v1, %v1325_v59  ;;  %v1453_v1 = vmul.f32 %v3037_v28, %v3037_v28 }
 0x207   : >> { %v1455_v59 = vmul.f32 %v3043_v25, %v3043_v25 }
 0x20a   : >> { %v1326_v30 = vpop.f32.mrf.mxu2  ;;  %v1375_v37 = vpop.f32.mrf.mxu3 }
 0x20b   : >> { %v1327_v21 = vadd.f32 %v1326_v30, %v3028_v58  ;;  %v1454_v30 = vmul.f32 %v3040_v31, %v3040_v31 }
 0x20d   : >> { %v3046_v49 = vadd.f32 %v1375_v37, %v1327_v21  ;;  %v1451_v21 = vmul.f32 %v3031_v2, %v3031_v2  ;;  %v1452_v37 = vmul.f32 %v3034_v39, %v3034_v39 }
 0x20f   : >> { %v1456_v6 = vmul.f32 %v3046_v49, %v3046_v49 }
 0x212   : >> { %v1329_v34 = vpop.f32.mrf.mxu2  ;;  %v1378_v15 = vpop.f32.mrf.mxu3 }
 0x213   : >> { %v1330_v52 = vadd.f32 %v1329_v34, %v3028_v58 }
 0x215   : >> { %v3049_v5 = vadd.f32 %v1378_v15, %v1330_v52 }
 0x217   : >> { %v1457_v19 = vmul.f32 %v3049_v5, %v3049_v5 }
 0x21a   : >> { %v1331_v40 = vpop.f32.mrf.mxu2  ;;  %v1380_v43 = vpop.f32.mrf.mxu3 }
 0x21b   : >> { %v1332_v16 = vadd.f32 %v1331_v40, %v3028_v58 }
 0x21d   : >> { %v3052_v35 = vadd.f32 %v1380_v43, %v1332_v16 }
 0x21f   : >> { %v1458_v10 = vmul.f32 %v3052_v35, %v3052_v35 }
 0x222   : >> { %v1334_v53 = vpop.f32.mrf.mxu2  ;;  %v1383_v22 = vpop.f32.mrf.mxu3 }
 0x223   : >> { %v1335_v36 = vadd.f32 %v1334_v53, %v3028_v58 }
 0x225   : >> { %v3055_v7 = vadd.f32 %v1383_v22, %v1335_v36 }
 0x22a   : >> { %v1336_v44 = vpop.f32.mrf.mxu2  ;;  %v1385_v11 = vpop.f32.mrf.mxu3 }
 0x22b   : >> { %v1337_v0 = vadd.f32 %v1336_v44, %v3028_v58 }
 0x22d   : >> { %v3058_v29 = vadd.f32 %v1385_v11, %v1337_v0 }
 0x22f   : >> { %v1460_v32 = vmul.f32 %v3058_v29, %v3058_v29 }
 0x232   : >> { %v1339_v27 = vpop.f32.mrf.mxu2  ;;  %v1388_v56 = vpop.f32.mrf.mxu3 }
 0x233   : >> { %v1340_v51 = vadd.f32 %v1339_v27, %v3028_v58 }
 0x235   : >> { %v3061_v38 = vadd.f32 %v1388_v56, %v1340_v51 }
 0x237   : >> { %1423 = vadd.xlane.f32.xlu1 %v3061_v38  ;;  %v1461_v33 = vmul.f32 %v3061_v38, %v3061_v38 }
 0x23a   : >> { %v1341_v47 = vpop.f32.mrf.mxu2  ;;  %v1390_v50 = vpop.f32.mrf.mxu3 }
 0x23b   : >> { %v1342_v9 = vadd.f32 %v1341_v47, %v3028_v58 }
 0x23d   : >> { %v3065_v62 = vadd.f32 %v1390_v50, %v1342_v9 }
 0x23f   : >> { %1425 = vadd.xlane.f32.xlu2 %v3065_v62  ;;  %v1462_v60 = vmul.f32 %v3065_v62, %v3065_v62 }
 0x242   : >> { %v1344_v57 = vpop.f32.mrf.mxu2  ;;  %v1393_v63 = vpop.f32.mrf.mxu3 }
 0x243   : >> { %v1345_v20 = vadd.f32 %v1344_v57, %v3028_v58 }
 0x245   : >> { %v3069_v8 = vadd.f32 %v1393_v63, %v1345_v20 }
 0x247   : >> { %1427 = vadd.xlane.f32.xlu0 %v3069_v8  ;;  %v1463_v54 = vmul.f32 %v3069_v8, %v3069_v8 }
 0x249   : >> { %1491 = vadd.xlane.f32.xlu2 %v1463_v54 }
 0x24a   : >> { %v1346_v18 = vpop.f32.mrf.mxu2  ;;  %v1395_v24 = vpop.f32.mrf.mxu3 }
 0x24b   : >> { %v1347_v45 = vadd.f32 %v1346_v18, %v3028_v58 }
 0x24d   : >> { %v3075_v61 = vadd.f32 %v1395_v24, %v1347_v45 }
 0x24f   : >> { %1429 = vadd.xlane.f32.xlu1 %v3075_v61  ;;  %v1464_v14 = vmul.f32 %v3075_v61, %v3075_v61 }
 0x251   : >> { %1493 = vadd.xlane.f32.xlu0 %v1464_v14 }
 0x252   : >> { %v1349_v13 = vpop.f32.mrf.mxu2  ;;  %v1398_v26 = vpop.f32.mrf.mxu3 }
 0x253   : >> { %v1350_v17 = vadd.f32 %v1349_v13, %v3028_v58 }
 0x255   : >> { %v3081_v42 = vadd.f32 %v1398_v26, %v1350_v17 }
 0x257   : >> { %1431 = vadd.xlane.f32.xlu2 %v3081_v42  ;;  %v1465_v41 = vmul.f32 %v3081_v42, %v3081_v42 }
 0x259   : >> { %1495 = vadd.xlane.f32.xlu1 %v1465_v41 }
 0x25a   : >> { %v1351_v55 = vpop.f32.mrf.mxu2  ;;  %v1400_v46 = vpop.f32.mrf.mxu3 }
 0x25b   : >> { %v1352_v23 = vadd.f32 %v1351_v55, %v3028_v58  ;;  %v1459_v58 = vmul.f32 %v3055_v7, %v3055_v7 }
 0x25d   : >> { %v3087_v48 = vadd.f32 %v1400_v46, %v1352_v23 }
 0x25f   : >> { %1433 = vadd.xlane.f32.xlu0 %v3087_v48  ;;  %v1466_v12 = vmul.f32 %v3087_v48, %v3087_v48 }
 0x261   : >> { %1497 = vadd.xlane.f32.xlu2 %v1466_v12  ;;  %1489 = vadd.xlane.f32.xlu1 %v1462_v60 }
 0x267   : >> { %1487 = vadd.xlane.f32.xlu0 %v1461_v33 }
 0x269   : >> { %1419 = vadd.xlane.f32.xlu2 %v3055_v7  ;;  %1483 = vadd.xlane.f32.xlu1 %v1459_v58 }
 0x26f   : >> { %1421 = vadd.xlane.f32.xlu0 %v3058_v29 }
 0x271   : >> { %1485 = vadd.xlane.f32.xlu2 %v1460_v32  ;;  %1417 = vadd.xlane.f32.xlu1 %v3052_v35 }
 0x277   : >> { %1415 = vadd.xlane.f32.xlu0 %v3049_v5 }
 0x279   : >> { %1479 = vadd.xlane.f32.xlu2 %v1457_v19  ;;  %1411 = vadd.xlane.f32.xlu1 %v3043_v25 }
 0x27f   : >> { %1481 = vadd.xlane.f32.xlu0 %v1458_v10 }
 0x281   : >> { %1413 = vadd.xlane.f32.xlu2 %v3046_v49  ;;  %1477 = vadd.xlane.f32.xlu1 %v1456_v6 }
 0x287   : >> { %1475 = vadd.xlane.f32.xlu0 %v1455_v59 }
 0x289   : >> { %1407 = vadd.xlane.f32.xlu2 %v3037_v28  ;;  %1471 = vadd.xlane.f32.xlu1 %v1453_v1 }
 0x28f   : >> { %1409 = vadd.xlane.f32.xlu0 %v3040_v31 }
 0x291   : >> { %1473 = vadd.xlane.f32.xlu2 %v1454_v30  ;;  %1405 = vadd.xlane.f32.xlu1 %v3034_v39 }
 0x297   : >> { %1403 = vadd.xlane.f32.xlu0 %v3031_v2 }
 0x299   : >> { %1467 = vadd.xlane.f32.xlu2 %v1451_v21 }
 0x29f   : >> { %1469 = vadd.xlane.f32.xlu0 %v1452_v37 }
 0x2aa   : >> { %v1424_v52 = vpop.xlane.xlu1 %1423 }
 0x2ab   : >> { %v3160_v59 = vmul.f32 0.01, %v1424_v52 }
 0x2b2   : >> { %v1426_v34 = vpop.xlane.xlu2 %1425 }
 0x2b3   : >> { %v3144_v13 = vmul.f32 0.01, %v1426_v34 }
 0x2b5   : >> { %v1526_v33 = vmul.f32 %v3144_v13, %v3144_v13 }
 0x2ba   : >> { %v1428_v15 = vpop.xlane.xlu0 %1427 }
 0x2bb   : >> { %v3126_v40 = vmul.f32 0.01, %v1428_v15 }
 0x2bc   : >> { %v1492_v16 = vpop.xlane.xlu2 %1491 }
 0x2bd   : >> { %v1527_v43 = vmul.f32 %v3126_v40, %v3126_v40  ;;  %v1511_v53 = vmul.f32 0.01, %v1492_v16 }
 0x2bf   : >> { %v1543_v36 = vsub.f32 %v1511_v53, %v1527_v43  ;;  %v1525_v53 = vmul.f32 %v3160_v59, %v3160_v59 }
 0x2c1   : >> { %v1559_v22 = vmax.f32 %v1543_v36, 0.0 }
 0x2c2   : >> { %v1430_v44 = vpop.xlane.xlu1 %1429 }
 0x2c3   : >> { %v1591_v0 = vadd.f32 1e-05, %v1559_v22  ;;  %v3130_v11 = vmul.f32 0.01, %v1430_v44 }
 0x2c4   : >> { %v1494_v27 = vpop.xlane.xlu0 %1493 }
 0x2c5   : >> { %2158 = vrsqrt.f32 %v1591_v0  ;;  %v1528_v56 = vmul.f32 %v3130_v11, %v3130_v11  ;;  %v1512_v51 = vmul.f32 0.01, %v1494_v27  ;;  %vm1721_vm2 = vweird.f32 %v1591_v0 }
 0x2c7   : >> { %v1544_v47 = vsub.f32 %v1512_v51, %v1528_v56 }
 0x2c9   : >> { %v1560_v50 = vmax.f32 %v1544_v47, 0.0 }
 0x2ca   : >> { %v1432_v9 = vpop.xlane.xlu2 %1431 }
 0x2cb   : >> { %v3134_v57 = vpop.eup %2158  ;;  %v3136_v63 = vmul.f32 0.01, %v1432_v9  ;;  %v3138_v20 = vadd.f32 1e-05, %v1560_v50 }
 0x2cc   : >> { %v1496_v54 = vpop.xlane.xlu1 %1495  ;;  %v1716_v18 = vmul.f32 %v3134_v57, %v1591_v0  ;;  %vm1722_vm1 = vweird.f32 %v3134_v57 }
 0x2cd   : >> { %v1529_v24 = vmul.f32 %v3136_v63, %v3136_v63  ;;  %v1513_v45 = vmul.f32 0.01, %v1496_v54  ;;  %2160 = vrsqrt.f32 %v3138_v20  ;;  %vm3182_vm3 = vmor %vm1721_vm2, %vm1722_vm1  ;;  %vm1731_vm7 = vweird.f32 %v3138_v20 }
 0x2ce   : >> { %v1717_v26 = vmul.f32 %v3134_v57, %v1716_v18 }
 0x2cf   : >> { %v1545_v14 = vsub.f32 %v1513_v45, %v1529_v24 }
 0x2d0   : >> { %v1718_v58 = vmul.f32 0.5, %v1717_v26 }
 0x2d1   : >> { %v1561_v17 = vmax.f32 %v1545_v14, 0.0 }
 0x2d2   : >> { %v1434_v41 = vpop.xlane.xlu0 %1433  ;;  %v1719_v21 = vsub.f32 1.5, %v1718_v58 }
 0x2d3   : >> { %v3147_v55 = vadd.f32 1e-05, %v1561_v17  ;;  %v3149_v23 = vmul.f32 0.01, %v1434_v41  ;;  %v3151_v46 = vpop.eup %2160 }
 0x2d4   : >> { %v1498_v12 = vpop.xlane.xlu2 %1497  ;;  %v1490_v60 = vpop.xlane.xlu1 %1489  ;;  %v1726_v32 = vmul.f32 %v3151_v46, %v3138_v20  ;;  %v1720_v51 = vmul.f32 %v3134_v57, %v1719_v21  ;;  %v3203_v21 = vperm.slane %v2399_v4, 0  ;;  %vm1732_vm5 = vweird.f32 %v3151_v46 }
 0x2d5   : >> { %2162 = vrsqrt.f32 %v3147_v55  ;;  %v1530_v19 = vmul.f32 %v3149_v23, %v3149_v23  ;;  %v1514_v10 = vmul.f32 0.01, %v1498_v12  ;;  %v1510_v6 = vmul.f32 0.01, %v1490_v60  ;;  %vm3240_vm9 = vmor %vm1731_vm7, %vm1732_vm5 }
 0x2d6   : >> { %v1727_v37 = vmul.f32 %v3151_v46, %v1726_v32  ;;  %v1724_v41 = vsel %vm3182_vm3, %v3134_v57, %v1720_v51  ;;  %v1573_v12 = vsub.f32 %v3061_v38, %v3160_v59  ;;  %v1575_v60 = vsub.f32 %v3069_v8, %v3126_v40 }
 0x2d7   : >> { %v1546_v1 = vsub.f32 %v1514_v10, %v1530_v19  ;;  %v1542_v30 = vsub.f32 %v1510_v6, %v1526_v33  ;;  %vm1741_vm6 = vweird.f32 %v3147_v55 }
 0x2d8   : >> { %v1728_v9 = vmul.f32 0.5, %v1727_v37  ;;  %v3611_v37 = vld [vmem:[#allocation9_spill] sm:$0xff]  ;;  %v1767_v40 = vmul.f32 %v1724_v41, %v1575_v60 }
 0x2d9   : >> { %v1562_v34 = vmax.f32 %v1546_v1, 0.0  ;;  %v1558_v15 = vmax.f32 %v1542_v30, 0.0  ;;  %v1574_v1 = vsub.f32 %v3065_v62, %v3144_v13  ;;  %v3206_v8 = vperm.slane %v3611_v37, 0 }
 0x2da   : >> { %v1488_v16 = vpop.xlane.xlu0 %1487  ;;  %v1729_v32 = vsub.f32 1.5, %v1728_v9  ;;  %v1786_v9 = vmul.f32 %v3203_v21, %v1767_v40 }
 0x2db   : >> { %v3163_v43 = vpop.eup %2162  ;;  %v1509_v36 = vmul.f32 0.01, %v1488_v16  ;;  %v3169_v44 = vadd.f32 1e-05, %v1562_v34  ;;  %v3171_v52 = vadd.f32 1e-05, %v1558_v15  ;;  %v1576_v15 = vsub.f32 %v3075_v61, %v3130_v11 }
 0x2dc   : >> { %v1736_v22 = vmul.f32 %v3163_v43, %v3147_v55  ;;  %v1420_v27 = vpop.xlane.xlu2 %1419  ;;  %v1484_v56 = vpop.xlane.xlu1 %1483  ;;  %vm1742_vm4 = vweird.f32 %v3163_v43  ;;  %v1730_v51 = vmul.f32 %v3151_v46, %v1729_v32 }
 0x2dd   : >> { %v1541_v47 = vsub.f32 %v1509_v36, %v1525_v53  ;;  %v3175_v50 = vmul.f32 0.01, %v1420_v27  ;;  %2164 = vrsqrt.f32 %v3169_v44  ;;  %v1507_v45 = vmul.f32 0.01, %v1484_v56  ;;  %vm3234_vm8 = vmor %vm1741_vm6, %vm1742_vm4 }
 0x2de   : >> { %v1737_v54 = vmul.f32 %v3163_v43, %v1736_v22  ;;  %2166 = vrsqrt.f32 %v3171_v52  ;;  %vm1751_vm10 = vweird.f32 %v3169_v44  ;;  %vm1711_vm12 = vweird.f32 %v3171_v52 }
 0x2df   : >> { %v1557_v18 = vmax.f32 %v1541_v47, 0.0  ;;  %v1523_v24 = vmul.f32 %v3175_v50, %v3175_v50 }
 0x2e0   : >> { %v1738_v26 = vmul.f32 0.5, %v1737_v54 }
 0x2e1   : >> { %v3186_v17 = vadd.f32 1e-05, %v1557_v18  ;;  %v1539_v0 = vsub.f32 %v1507_v45, %v1523_v24  ;;  %v1577_v18 = vsub.f32 %v3081_v42, %v3136_v63  ;;  %v1578_v45 = vsub.f32 %v3087_v48, %v3149_v23 }
 0x2e2   : >> { %v1739_v33 = vsub.f32 1.5, %v1738_v26  ;;  %v1422_v58 = vpop.xlane.xlu0 %1421  ;;  %v1734_v48 = vsel %vm3240_vm9, %v3151_v46, %v1730_v51 }
 0x2e3   : >> { %2168 = vrsqrt.f32 %v3186_v17  ;;  %v1555_v19 = vmax.f32 %v1539_v0, 0.0  ;;  %v3196_v10 = vmul.f32 0.01, %v1422_v58  ;;  %v3198_v6 = vpop.eup %2164  ;;  %vm1701_vm15 = vweird.f32 %v3186_v17 }
 0x2e4   : >> { %v1486_v57 = vpop.xlane.xlu2 %1485  ;;  %v1418_v30 = vpop.xlane.xlu1 %1417  ;;  %v1746_v16 = vmul.f32 %v3198_v6, %v3169_v44  ;;  %v1740_v22 = vmul.f32 %v3163_v43, %v1739_v33  ;;  %vm1752_vm11 = vweird.f32 %v3198_v6 }
 0x2e5   : >> { %v3208_v34 = vpop.eup %2166  ;;  %v3214_v53 = vadd.f32 1e-05, %v1555_v19  ;;  %v1524_v36 = vmul.f32 %v3196_v10, %v3196_v10  ;;  %v1508_v56 = vmul.f32 0.01, %v1486_v57  ;;  %v3260_v19 = vadd.f32 %v3206_v8, %v1786_v9  ;;  %vm1753_vm13 = vmor %vm1751_vm10, %vm1752_vm11 }
 0x2e6   : >> { %v1706_v27 = vmul.f32 %v3208_v34, %v3171_v52  ;;  %v1747_v61 = vmul.f32 %v3198_v6, %v1746_v16  ;;  %v1744_v42 = vsel %vm3234_vm8, %v3163_v43, %v1740_v22  ;;  %v1768_v9 = vmul.f32 %v1734_v48, %v1576_v15 }
 0x2e7   : >> { %2170 = vrsqrt.f32 %v3214_v53  ;;  %v1540_v47 = vsub.f32 %v1508_v56, %v1524_v36  ;;  %v1769_v46 = vmul.f32 %v1744_v42, %v1577_v18  ;;  %v3277_v56 = vmul.f32 0.01, %v1418_v30 }
 0x2e8   : >> { %v1707_v11 = vmul.f32 %v3208_v34, %v1706_v27  ;;  %v1748_v55 = vmul.f32 0.5, %v1747_v61  ;;  %v1571_v27 = vsub.f32 %v3055_v7, %v3175_v50  ;;  %v1821_v44 = vmax.f32 %v3260_v19, 0.0 }
 0x2e9   : >> { %v3229_v54 = vpop.eup %2168  ;;  %v1556_v20 = vmax.f32 %v1540_v47, 0.0  ;;  %vm1712_vm14 = vweird.f32 %v3208_v34  ;;  %v1787_v48 = vmul.f32 %v3203_v21, %v1768_v9  ;;  %vm1681_vm2 = vweird.f32 %v3214_v53 }
 0x2ea   : >> { %v1708_v26 = vmul.f32 0.5, %v1707_v11  ;;  %v1696_v0 = vmul.f32 %v3229_v54, %v3186_v17  ;;  %v1416_v41 = vpop.xlane.xlu0 %1415  ;;  %v1749_v63 = vsub.f32 1.5, %v1748_v55  ;;  %v1788_v55 = vmul.f32 %v3203_v21, %v1769_v46  ;;  %vm3302_vm1 = vmor %vm1711_vm12, %vm1712_vm14 }
 0x2eb   : >> { %v3250_v60 = vmul.f32 0.01, %v1416_v41  ;;  %v3257_v33 = vadd.f32 1e-05, %v1556_v20  ;;  %vm1702_vm0 = vweird.f32 %v3229_v54  ;;  %v1572_v41 = vsub.f32 %v3058_v29, %v3196_v10 }
 0x2ec   : >> { %v1697_v23 = vmul.f32 %v3229_v54, %v1696_v0  ;;  %v1480_v58 = vpop.xlane.xlu2 %1479  ;;  %v1412_v32 = vpop.xlane.xlu1 %1411  ;;  %v1750_v57 = vmul.f32 %v3198_v6, %v1749_v63  ;;  %v1709_v16 = vsub.f32 1.5, %v1708_v26  ;;  %v1522_v0 = vmul.f32 %v3277_v56, %v3277_v56  ;;  %vm3322_vm3 = vmor %vm1701_vm15, %vm1702_vm0 }
 0x2ed   : >> { %v3262_v43 = vpop.eup %2170  ;;  %v1521_v37 = vmul.f32 %v3250_v60, %v3250_v60  ;;  %v1505_v40 = vmul.f32 0.01, %v1480_v58  ;;  %2172 = vrsqrt.f32 %v3257_v33  ;;  %vm1691_vm6 = vweird.f32 %v3257_v33 }
 0x2ee   : >> { %v1698_v36 = vmul.f32 0.5, %v1697_v23  ;;  %v1676_v22 = vmul.f32 %v3262_v43, %v3214_v53  ;;  %v1754_v47 = vsel %vm1753_vm13, %v3198_v6, %v1750_v57  ;;  %v1710_v14 = vmul.f32 %v3208_v34, %v1709_v16 }
 0x2ef   : >> { %v1537_v51 = vsub.f32 %v1505_v40, %v1521_v37  ;;  %v1770_v24 = vmul.f32 %v1754_v47, %v1578_v45  ;;  %v1807_v40 = vadd.f32 %v3206_v8, %v1788_v55  ;;  %vm1682_vm4 = vweird.f32 %v3262_v43 }
 0x2f0   : >> { %v1699_v61 = vsub.f32 1.5, %v1698_v36  ;;  %v1677_v11 = vmul.f32 %v3262_v43, %v1676_v22  ;;  %v3313_v36 = vmul.f32 0.01, %v1412_v32  ;;  %v1714_v52 = vsel %vm3302_vm1, %v3208_v34, %v1710_v14  ;;  %vm3361_vm7 = vmor %vm1681_vm2, %vm1682_vm4 }
 0x2f1   : >> { %v1553_v18 = vmax.f32 %v1537_v51, 0.0  ;;  %v1789_v15 = vmul.f32 %v3203_v21, %v1770_v24  ;;  %v1806_v34 = vadd.f32 %v3206_v8, %v1787_v48  ;;  %v1823_v24 = vmax.f32 %v1807_v40, 0.0 }
 0x2f2   : >> { %v1678_v30 = vmul.f32 0.5, %v1677_v11  ;;  %v1482_v26 = vpop.xlane.xlu0 %1481  ;;  %v1700_v45 = vmul.f32 %v3229_v54, %v1699_v61 }
 0x2f3   : >> { %v3288_v20 = vadd.f32 1e-05, %v1553_v18  ;;  %v1506_v6 = vmul.f32 0.01, %v1482_v26  ;;  %v3296_v23 = vpop.eup %2172  ;;  %v1808_v32 = vadd.f32 %v3206_v8, %v1789_v15  ;;  %v1519_v26 = vmul.f32 %v3313_v36, %v3313_v36 }
 0x2f4   : >> { %v1414_v42 = vpop.xlane.xlu2 %1413  ;;  %v1478_v63 = vpop.xlane.xlu1 %1477  ;;  %v1679_v46 = vsub.f32 1.5, %v1678_v30  ;;  %v1686_v16 = vmul.f32 %v3296_v23, %v3257_v33  ;;  %v1704_v17 = vsel %vm3322_vm3, %v3229_v54, %v1700_v45  ;;  %vm1692_vm5 = vweird.f32 %v3296_v23 }
 0x2f5   : >> { %2174 = vrsqrt.f32 %v3288_v20  ;;  %v1538_v57 = vsub.f32 %v1506_v6, %v1522_v0  ;;  %v3308_v37 = vmul.f32 0.01, %v1414_v42  ;;  %v1504_v11 = vmul.f32 0.01, %v1478_v63  ;;  %vm3370_vm8 = vmor %vm1691_vm6, %vm1692_vm5 }
 0x2f6   : >> { %v1687_v47 = vmul.f32 %v3296_v23, %v1686_v16  ;;  %v1824_v55 = vmax.f32 %v1808_v32, 0.0  ;;  %v1680_v14 = vmul.f32 %v3262_v43, %v1679_v46  ;;  %v1766_v6 = vmul.f32 %v1714_v52, %v1574_v1 }
 0x2f7   : >> { %v1554_v51 = vmax.f32 %v1538_v57, 0.0  ;;  %v1520_v61 = vmul.f32 %v3308_v37, %v3308_v37  ;;  %v1765_v42 = vmul.f32 %v1704_v17, %v1573_v12  ;;  %v1822_v40 = vmax.f32 %v1806_v34, 0.0 }
 0x2f8   : >> { %v1688_v30 = vmul.f32 0.5, %v1687_v47  ;;  %v1832_v45 = vpack.c.bf16 %v1824_v55, %v1823_v24  ;;  %v1785_v33 = vmul.f32 %v3203_v21, %v1766_v6  ;;  %v1570_v34 = vsub.f32 %v3052_v35, %v3277_v56 }
 0x2f9   : >> { %v3335_v9 = vadd.f32 1e-05, %v1554_v51  ;;  %v1536_v18 = vsub.f32 %v1504_v11, %v1520_v61  ;;  %v1784_v22 = vmul.f32 %v3203_v21, %v1765_v42  ;;  %v1684_v11 = vsel %vm3361_vm7, %v3262_v43, %v1680_v14 }
 0x2fa   : >> { %v1476_v0 = vpop.xlane.xlu0 %1475  ;;  %v1689_v63 = vsub.f32 1.5, %v1688_v30  ;;  %1833 = vmatpush.bf16.xpose.msrb.mxu0 %v1832_v45  ;;  %v1569_v17 = vsub.f32 %v3049_v5, %v3250_v60  ;;  %v1831_v24 = vpack.c.bf16 %v1822_v40, %v1821_v44  ;;  %v1763_v60 = vmul.f32 %v1684_v11, %v1571_v27 }
 0x2fb   : >> { %v3343_v15 = vpop.eup %2174  ;;  %2176 = vrsqrt.f32 %v3335_v9  ;;  %v1552_v54 = vmax.f32 %v1536_v18, 0.0  ;;  %v1503_v58 = vmul.f32 0.01, %v1476_v0  ;;  %v1803_v5 = vadd.f32 %v3206_v8, %v1784_v22 }
 0x2fc   : >> { %v1656_v48 = vmul.f32 %v3343_v15, %v3288_v20  ;;  %v1408_v57 = vpop.xlane.xlu2 %1407  ;;  %v1472_v62 = vpop.xlane.xlu1 %1471  ;;  %v1690_v59 = vmul.f32 %v3296_v23, %v1689_v63  ;;  %vm1662_vm9 = vweird.f32 %v3343_v15  ;;  %v1804_v6 = vadd.f32 %v3206_v8, %v1785_v33 }
 0x2fd   : >> { %v3353_v13 = vadd.f32 1e-05, %v1552_v54  ;;  %v3355_v1 = vmul.f32 0.01, %v1408_v57  ;;  %v1535_v46 = vsub.f32 %v1503_v58, %v1519_v26  ;;  %v1501_v52 = vmul.f32 0.01, %v1472_v62 }
 0x2fe   : >> { %v1657_v12 = vmul.f32 %v3343_v15, %v1656_v48  ;;  %v1694_v32 = vsel %vm3370_vm8, %v3296_v23, %v1690_v59  ;;  %v1567_v27 = vsub.f32 %v3043_v25, %v3313_v36  ;;  %vm1661_vm10 = vweird.f32 %v3288_v20 }
 0x2ff   : >> { %2178 = vrsqrt.f32 %v3353_v13  ;;  %v1517_v53 = vmul.f32 %v3355_v1, %v3355_v1  ;;  %v1551_v61 = vmax.f32 %v1535_v46, 0.0  ;;  %v1764_v23 = vmul.f32 %v1694_v32, %v1572_v41  ;;  %vm3425_vm11 = vmor %vm1661_vm10, %vm1662_vm9 }
 0x300   : >> { %v1658_v51 = vmul.f32 0.5, %v1657_v12  ;;  %v1819_v48 = vmax.f32 %v1803_v5, 0.0  ;;  %v1782_v40 = vmul.f32 %v3203_v21, %v1763_v60  ;;  %v1568_v20 = vsub.f32 %v3046_v49, %v3308_v37 }
 0x301   : >> { %v3384_v47 = vpop.eup %2176  ;;  %v1533_v18 = vsub.f32 %v1501_v52, %v1517_v53  ;;  %v3394_v14 = vadd.f32 1e-05, %v1551_v61  ;;  %v1783_v42 = vmul.f32 %v3203_v21, %v1764_v23  ;;  %v1820_v59 = vmax.f32 %v1804_v6, 0.0 }
 0x302   : >> { %v1659_v55 = vsub.f32 1.5, %v1658_v51  ;;  %v1666_v43 = vmul.f32 %v3384_v47, %v3335_v9  ;;  %v1410_v30 = vpop.xlane.xlu0 %1409  ;;  %1834 = vmatpush.bf16.xpose.msrb.mxu0 %v1831_v24  ;;  %vm1672_vm12 = vweird.f32 %v3384_v47  ;;  %vm1671_vm13 = vweird.f32 %v3335_v9 }
 0x303   : >> { %v1549_v26 = vmax.f32 %v1533_v18, 0.0  ;;  %v3399_v0 = vmul.f32 0.01, %v1410_v30  ;;  %2180 = vrsqrt.f32 %v3394_v14  ;;  %v1802_v52 = vadd.f32 %v3206_v8, %v1783_v42  ;;  %vm3442_vm14 = vmor %vm1671_vm13, %vm1672_vm12 }
 0x304   : >> { %v1667_v19 = vmul.f32 %v3384_v47, %v1666_v43  ;;  %v1474_v44 = vpop.xlane.xlu2 %1473  ;;  %v1660_v10 = vmul.f32 %v3343_v15, %v1659_v55  ;;  %v1830_v11 = vpack.c.bf16 %v1820_v59, %v1819_v48  ;;  %v1801_v9 = vadd.f32 %v3206_v8, %v1782_v40 }
 0x305   : >> { %v3409_v29 = vpop.eup %2178  ;;  %v3412_v41 = vadd.f32 1e-05, %v1549_v26  ;;  %v1518_v7 = vmul.f32 %v3399_v0, %v3399_v0  ;;  %v1502_v50 = vmul.f32 0.01, %v1474_v44  ;;  %vm1651_vm0 = vweird.f32 %v3353_v13 }
 0x306   : >> { %v1668_v54 = vmul.f32 0.5, %v1667_v19  ;;  %v1646_v45 = vmul.f32 %v3409_v29, %v3353_v13  ;;  %v1664_v12 = vsel %vm3425_vm11, %v3343_v15, %v1660_v10  ;;  %v1406_v15 = vpop.xlane.xlu1 %1405  ;;  %vm1652_vm15 = vweird.f32 %v3409_v29 }
 0x307   : >> { %2182 = vrsqrt.f32 %v3412_v41  ;;  %v1534_v63 = vsub.f32 %v1502_v50, %v1518_v7  ;;  %v1761_v43 = vmul.f32 %v1664_v12, %v1569_v17  ;;  %v3466_v19 = vmul.f32 0.01, %v1406_v15  ;;  %vm3477_vm2 = vmor %vm1651_vm0, %vm1652_vm15 }
 0x308   : >> { %v1669_v57 = vsub.f32 1.5, %v1668_v54  ;;  %v1647_v62 = vmul.f32 %v3409_v29, %v1646_v45  ;;  %vm1641_vm1 = vweird.f32 %v3394_v14  ;;  %v1817_v7 = vmax.f32 %v1801_v9, 0.0 }
 0x309   : >> { %v1550_v38 = vmax.f32 %v1534_v63, 0.0  ;;  %v3437_v46 = vpop.eup %2180  ;;  %v1780_v50 = vmul.f32 %v3203_v21, %v1761_v43  ;;  %vm1621_vm6 = vweird.f32 %v3412_v41 }
 0x30a   : >> { %v1670_v33 = vmul.f32 %v3384_v47, %v1669_v57  ;;  %v1648_v16 = vmul.f32 0.5, %v1647_v62  ;;  %v1404_v53 = vpop.xlane.xlu0 %1403  ;;  %v1636_v51 = vmul.f32 %v3437_v46, %v3394_v14  ;;  %1835 = vmatpush.bf16.xpose.msrb.mxu0 %v1830_v11  ;;  %vm1642_vm3 = vweird.f32 %v3437_v46 }
 0x30b   : >> { %v3448_v61 = vadd.f32 1e-05, %v1550_v38  ;;  %v3450_v32 = vmul.f32 0.01, %v1404_v53  ;;  %vm1643_vm4 = vmor %vm1641_vm1, %vm1642_vm3 }
 0x30c   : >> { %v1649_v18 = vsub.f32 1.5, %v1648_v16  ;;  %v1468_v24 = vpop.xlane.xlu2 %1467  ;;  %v1674_v55 = vsel %vm3442_vm14, %v3384_v47, %v1670_v33  ;;  %v1637_v23 = vmul.f32 %v3437_v46, %v1636_v51  ;;  %v1818_v47 = vmax.f32 %v1802_v52, 0.0 }
 0x30d   : >> { %v3456_v30 = vpop.eup %2182  ;;  %2184 = vrsqrt.f32 %v3448_v61  ;;  %v1515_v26 = vmul.f32 %v3450_v32, %v3450_v32  ;;  %v1499_v44 = vmul.f32 0.01, %v1468_v24  ;;  %v1762_v6 = vmul.f32 %v1674_v55, %v1570_v34 }
 0x30e   : >> { %v1650_v5 = vmul.f32 %v3409_v29, %v1649_v18  ;;  %v1616_v60 = vmul.f32 %v3456_v30, %v3412_v41  ;;  %v1638_v17 = vmul.f32 0.5, %v1637_v23  ;;  %v1516_v34 = vmul.f32 %v3466_v19, %v3466_v19 }
 0x30f   : >> { %v1531_v45 = vsub.f32 %v1499_v44, %v1515_v26  ;;  %v1781_v35 = vmul.f32 %v3203_v21, %v1762_v6  ;;  %v1829_v42 = vpack.c.bf16 %v1818_v47, %v1817_v7  ;;  %vm1622_vm5 = vweird.f32 %v3456_v30 }
 0x310   : >> { %v1617_v10 = vmul.f32 %v3456_v30, %v1616_v60  ;;  %v1639_v13 = vsub.f32 1.5, %v1638_v17  ;;  %v1654_v48 = vsel %vm3477_vm2, %v3409_v29, %v1650_v5  ;;  %v1799_v33 = vadd.f32 %v3206_v8, %v1780_v50  ;;  %vm3504_vm7 = vmor %vm1621_vm6, %vm1622_vm5 }
 0x311   : >> { %v1547_v62 = vmax.f32 %v1531_v45, 0.0  ;;  %v1800_v38 = vadd.f32 %v3206_v8, %v1781_v35  ;;  %v1760_v52 = vmul.f32 %v1654_v48, %v1568_v20  ;;  %v1565_v41 = vsub.f32 %v3037_v28, %v3355_v1 }
 0x312   : >> { %v1618_v56 = vmul.f32 0.5, %v1617_v10  ;;  %v1470_v63 = vpop.xlane.xlu0 %1469  ;;  %v1640_v57 = vmul.f32 %v3437_v46, %v1639_v13  ;;  %1836 = vmatpush.bf16.xpose.msrb.mxu0 %v1829_v42  ;;  %v1815_v25 = vmax.f32 %v1799_v33, 0.0  ;;  %vm1631_vm9 = vweird.f32 %v3448_v61 }
 0x313   : >> { %v2185_v58 = vpop.eup %2184  ;;  %v1500_v40 = vmul.f32 0.01, %v1470_v63  ;;  %v1579_v16 = vadd.f32 1e-05, %v1547_v62  ;;  %v1779_v36 = vmul.f32 %v3203_v21, %v1760_v52  ;;  %v3632_v52 = vld [vmem:[#allocation10_spill] sm:$0xff] }
 0x314   : >> { %v1619_v59 = vsub.f32 1.5, %v1618_v56  ;;  %v1626_v12 = vmul.f32 %v2185_v58, %v3448_v61  ;;  %v1644_v53 = vsel %vm1643_vm4, %v3437_v46, %v1640_v57  ;;  %v1816_v46 = vmax.f32 %v1800_v38, 0.0 }
 0x315   : >> { %v1532_v29 = vsub.f32 %v1500_v40, %v1516_v34  ;;  %v1759_v51 = vmul.f32 %v1644_v53, %v1567_v27  ;;  %2186 = vrsqrt.f32 %v1579_v16  ;;  %vm1632_vm8 = vweird.f32 %v2185_v58 }
 0x316   : >> { %v1620_v22 = vmul.f32 %v3456_v30, %v1619_v59  ;;  %v1627_v14 = vmul.f32 %v2185_v58, %v1626_v12  ;;  %v1828_v24 = vpack.c.bf16 %v1816_v46, %v1815_v25  ;;  %vm1633_vm10 = vmor %vm1631_vm9, %vm1632_vm8  ;;  %v1798_v28 = vadd.f32 %v3206_v8, %v1779_v36 }
 0x317   : >> { %v1548_v11 = vmax.f32 %v1532_v29, 0.0  ;;  %v1778_v49 = vmul.f32 %v3203_v21, %v1759_v51  ;;  %vm1601_vm12 = vweird.f32 %v1579_v16  ;;  %v1563_v34 = vsub.f32 %v3031_v2, %v3450_v32 }
 0x318   : >> { %v1628_v18 = vmul.f32 0.5, %v1627_v14  ;;  %v1624_v37 = vsel %vm3504_vm7, %v3456_v30, %v1620_v22  ;;  %v1566_v30 = vsub.f32 %v3040_v31, %v3399_v0  ;;  %v1814_v6 = vmax.f32 %v1798_v28, 0.0 }
 0x319   : >> { %v1580_v20 = vadd.f32 1e-05, %v1548_v11  ;;  %v1797_v9 = vadd.f32 %v3206_v8, %v1778_v49  ;;  %v1757_v55 = vmul.f32 %v1624_v37, %v1565_v41  ;;  %v1564_v40 = vsub.f32 %v3034_v39, %v3466_v19  ;;  %v3634_v39 = vld [vmem:[#allocation11_spill] sm:$0xff] }
 0x31a   : >> { %v1629_v27 = vsub.f32 1.5, %v1628_v18  ;;  %1837 = vmatpush.bf16.xpose.msrb.mxu0 %v1828_v24 }
 0x31b   : >> { %2188 = vrsqrt.f32 %v1580_v20  ;;  %v2187_v23 = vpop.eup %2186  ;;  %v1813_v5 = vmax.f32 %v1797_v9, 0.0  ;;  %v1776_v47 = vmul.f32 %v3203_v21, %v1757_v55  ;;  %vm1611_vm15 = vweird.f32 %v1580_v20 }
 0x31c   : >> { %v1630_v43 = vmul.f32 %v2185_v58, %v1629_v27  ;;  %v1596_v1 = vmul.f32 %v2187_v23, %v1579_v16  ;;  %vm1602_vm11 = vweird.f32 %v2187_v23 }
 0x31d   : >> { %v1827_v50 = vpack.c.bf16 %v1814_v6, %v1813_v5  ;;  %v1795_v31 = vadd.f32 %v3206_v8, %v1776_v47  ;;  %vm1603_vm13 = vmor %vm1601_vm12, %vm1602_vm11 }
 0x31e   : >> { %v1634_v26 = vsel %vm1633_vm10, %v2185_v58, %v1630_v43  ;;  %v1597_v17 = vmul.f32 %v2187_v23, %v1596_v1 }
 0x31f   : >> { %v1758_v60 = vmul.f32 %v1634_v26, %v1566_v30  ;;  %v1811_v42 = vmax.f32 %v1795_v31, 0.0 }
 0x320   : >> { %v1598_v61 = vmul.f32 0.5, %v1597_v17 }
 0x321   : >> { %v2189_v44 = vpop.eup %2188  ;;  %v1777_v10 = vmul.f32 %v3203_v21, %v1758_v60 }
 0x322   : >> { %v1606_v7 = vmul.f32 %v2189_v44, %v1580_v20  ;;  %v1599_v54 = vsub.f32 1.5, %v1598_v61  ;;  %1838 = vmatpush.bf16.xpose.msrb.mxu0 %v1827_v50  ;;  %vm1612_vm14 = vweird.f32 %v2189_v44 }
 0x323   : >> { %v1796_v0 = vadd.f32 %v3206_v8, %v1777_v10  ;;  %vm1613_vm0 = vmor %vm1611_vm15, %vm1612_vm14 }
 0x324   : >> { %v1607_v13 = vmul.f32 %v2189_v44, %v1606_v7  ;;  %v1600_v35 = vmul.f32 %v2187_v23, %v1599_v54 }
 0x325   : >> { %v1812_v45 = vmax.f32 %v1796_v0, 0.0 }
 0x326   : >> { %v1608_v56 = vmul.f32 0.5, %v1607_v13  ;;  %v1604_v48 = vsel %vm1603_vm13, %v2187_v23, %v1600_v35 }
 0x327   : >> { %v1826_v58 = vpack.c.bf16 %v1812_v45, %v1811_v42  ;;  %v1755_v57 = vmul.f32 %v1604_v48, %v1563_v34 }
 0x328   : >> { %v1609_v63 = vsub.f32 1.5, %v1608_v56 }
 0x329   : >> { %v1774_v38 = vmul.f32 %v3203_v21, %v1755_v57 }
 0x32a   : >> { %v1610_v62 = vmul.f32 %v2189_v44, %v1609_v63  ;;  %1839 = vmatpush.bf16.xpose.msrb.mxu0 %v1826_v58 }
 0x32b   : >> { %v1793_v12 = vadd.f32 %v3206_v8, %v1774_v38 }
 0x32c   : >> { %v1614_v59 = vsel %vm1613_vm0, %v2189_v44, %v1610_v62 }
 0x32d   : >> { %v1756_v2 = vmul.f32 %v1614_v59, %v1564_v40  ;;  %v1809_v16 = vmax.f32 %v1793_v12, 0.0 }
 0x32f   : >> { %v1775_v32 = vmul.f32 %v3203_v21, %v1756_v2 }
 0x331   : >> { %v1794_v33 = vadd.f32 %v3206_v8, %v1775_v32 }
 0x333   : >> { %v1810_v29 = vmax.f32 %v1794_v33, 0.0 }
 0x335   : >> { %v1825_v53 = vpack.c.bf16 %v1810_v29, %v1809_v16 }
 0x337   : >> { %1840 = vmatpush.bf16.xpose.msrb.mxu0 %v1825_v53 }
 0x33e   : >> { %1841 = vmatmul.bf16.vlgmr.msrb.gmra.mxu0 %v3632_v52 }
 0x3bb   : >> { %v1842_v22 = vpop.f32.mrf.mxu0 }
 0x3bc   : >> { %v1843_v19 = vadd.f32 %v1842_v22, %v3634_v39 }
 0x3be   : >> { %1847 = vst [vmem:[%s1846_s14] sm:$0x1] %v1843_v19  ;;  %s2204_s14 = sshra.s32 (%p398_p11), %s1864_s30, 4  ;;  %s2205_s14 = int_to_ptr.hbm [resolvable:$true] %s2204_s14 }
 0x3bf   : > { %400 = sbr.rel (!%p398_p11) target bundleno = 33 (0x21), region = 108  ;;  %s2206_s15 = scalar_lea.hbm (%p398_p11), %s2205_s14, 8 }
 0x3c0   : > { %p2207_p12 = scmp.ne.s32.totalorder (%p398_p11), %s2205_s14, %s2206_s15  ;;  %p2211_p1 = scmp.lt.s32.totalorder (%p398_p11), %s2205_s14, %s3586_s11 }
 0x3c1   : > { %p2212_p2 = scmp.lt.s32.totalorder (%p398_p11), %s2210_s1, %s2206_s15 }
 0x3c2   : > { %p2208_p13 = pnand (%p398_p11), %p2207_p12, %p2360_p5 }
 0x3c3   : >> { %v1844_v14 = vpop.f32.mrf.mxu0  ;;  %p2213_p3 = por (%p398_p11), %p2212_p2, %p2211_p1 }
 0x3c4   : > { %p2209_p0 = pneg %p2208_p13 }
 0x3c6   : > { %p2214_p4 = pnand %p2213_p3, %p2209_p0 }
 0x3c8   : > { %2217 = shalt.err (!%p2214_p4)
}
 0x3c9   : > { %2079 = dma.vmem_to_hbm [thread:$0]  (%p2360_p5), %s1862_s26, 128, %s1864_s30, %s1849_s0  }
 0x3ca PF: > { %p2085_p7 = scmp.ge.s32.totalorder %s2256_s20, 2  ;;  %s1875_s16 = sand.u32 1, %s2244_s17  }
 0x3cb   : > { %s1876_s29 = scalar_lea.sflag [#allocation3], %s1875_s16 }
 0x3cc   : > { %p2082_p8 = pnand %p2085_p7, %p2364_p6 }
 0x3ce   : > { %p2083_p9 = pneg %p2082_p8 }
 0x3d0   : > { %2239 = dma.done.wait (%p2083_p9), %s1876_s29, 128  }
 0x3d1   : > { %2241 = vsyncadd (%p2083_p9), %s1876_s29, 4294967168  ;;  %s3637_s1 = sld [smem:[#allocation5_spill]]  ;;  %p21_p10 = scmp.ge.s32.totalorder %s2347_s23, 4  }
 0x3d2   : > { %s3638_s17 = smov %s2248_s18  ;;  %s3639_s18 = smov %s2252_s19 }
 0x3d3   : > { %s3641_s20 = smov %s2347_s23  ;;  %23 = sbr.rel (!%p21_p10) target bundleno = 7 (0x7), region = 119 }
 0x3d7   : > { %s3640_s19 = smov %s3637_s1 }
 0x3d8   :  { %1882 = vsyncpa [#allocation3], 1 }
 0x3d9   :  { %1884 = vsyncpa [#allocation3 + $0x1], 1 }

</bundles_post_ra>
